<compile_context>
chip_gen: v5e
topology: v5e:2x2
jax: 0.10.0
libtpu: 0.0.40
codegen_flags: <defaults>
</compile_context>

<pallas_src>
import jax
import jax.numpy as jnp
from jax.experimental import pallas as pl
from jax.experimental.pallas import tpu as pltpu

# ---------------- model hyper-parameters ------------------------------------
SIGNAL_LENGTH = 128
WINDOW_SIZE = 16                                   # params.window_size
TRANS_EMBEDDING_SIZE = 8
TRANS_HEAD_NB = 4
EMBED = TRANS_EMBEDDING_SIZE * TRANS_HEAD_NB       # 32
TRANS_HIDDEN_NB = 64                               # FFN hidden
TRANS_LAYER_NB = 2
NUM_DEV = 10                                       # classes
N_PATCH = SIGNAL_LENGTH // WINDOW_SIZE             # 8
HEAD_DIM = EMBED // TRANS_HEAD_NB                  # 8
LN_EPS = 1e-5                                      # PyTorch LayerNorm default
BATCH = 2
PAD_CLASSES = 128                                  # lane-dense class tile width
MAX_BLOCK_B = 128                                  # batch rows per grid step

# ---------------- packed-parameter slab layout -------------------------------
# const slab: (CONST_ROWS, 128)
R_WPATCH = 0          # 16 rows, cols [0,32)   Conv1d weight^T  (W, E)
R_POS = 16            # 8 rows,  cols [0,32)   pos_embedding    (N, E)
R_WC = 24             # 32 rows, cols [0,128)  class_fc weight^T, zero-padded
R_BPATCH = 56         # 1 row,   cols [0,32)
R_BC = 57             # 1 row,   cols [0,128)  class_fc bias, -1e30 padded
CONST_ROWS = 64

# per-layer slab: (TRANS_LAYER_NB, LAYER_ROWS, 128)
R_WQ = 0              # 32 rows (E,E)
R_WK = 32             # 32 rows (E,E)
R_WV = 64             # 32 rows (E,E)
R_WO = 96             # 32 rows: stacked per-head (D,E) blocks == out_proj^T
R_W1 = 128            # 32 rows (E,FF)  cols [0,64)
R_W2 = 160            # 64 rows (FF,E)  cols [0,32)
R_BQ, R_BK, R_BV, R_BO = 224, 225, 226, 227
R_B1, R_B2 = 228, 229
R_G1, R_BE1, R_G2, R_BE2 = 230, 231, 232, 233
LAYER_ROWS = 240


# ----------------------------- kernel ----------------------------------------
def _layer_norm(x, gamma, beta):
    # fused statistics: one pass over x for sum and sum-of-squares
    inv_e = 1.0 / EMBED
    s1 = jnp.sum(x, axis=-1, keepdims=True)
    s2 = jnp.sum(x * x, axis=-1, keepdims=True)
    mu = s1 * inv_e
    var = jnp.maximum(s2 * inv_e - mu * mu, 0.0)
    return (x - mu) * jax.lax.rsqrt(var + LN_EPS) * gamma + beta


def vit_fused_kernel(patches_ref, const_ref, layers_ref, o_ref):
    # patches: (block_b * N, W)   const: (64,128)   layers: (L,240,128)
    BN = patches_ref.shape[0]
    B = BN // N_PATCH
    scale = 1.0 / jnp.sqrt(jnp.float32(HEAD_DIM))

    # --- patch embedding: Conv1d(kernel=stride=W, C_in=1) == per-patch matmul
    w_patch = const_ref[R_WPATCH:R_WPATCH + WINDOW_SIZE, :EMBED]
    b_patch = const_ref[R_BPATCH:R_BPATCH + 1, :EMBED]
    x = jnp.dot(patches_ref[...], w_patch,
                preferred_element_type=jnp.float32) + b_patch
    pos = const_ref[R_POS:R_POS + N_PATCH, :EMBED]                 # (N, E)
    x = x.reshape(B, N_PATCH, EMBED) + pos[None, :, :]
    x2 = x.reshape(BN, EMBED)

    # --- TransformerEncoder: post-norm layers, relu FFN, batch_first, eval mode
    for l in range(TRANS_LAYER_NB):                 # static unroll (2 layers)
        # merged Q/K/V projections: 3 matmuls per layer (not 12)
        wq = layers_ref[l, R_WQ:R_WQ + EMBED, :EMBED]
        wk = layers_ref[l, R_WK:R_WK + EMBED, :EMBED]
        wv = layers_ref[l, R_WV:R_WV + EMBED, :EMBED]
        bq = layers_ref[l, R_BQ:R_BQ + 1, :EMBED]
        bk = layers_ref[l, R_BK:R_BK + 1, :EMBED]
        bv = layers_ref[l, R_BV:R_BV + 1, :EMBED]
        q = (jnp.dot(x2, wq, preferred_element_type=jnp.float32) + bq
             ).reshape(B, N_PATCH, EMBED)
        k = (jnp.dot(x2, wk, preferred_element_type=jnp.float32) + bk
             ).reshape(B, N_PATCH, EMBED)
        v = (jnp.dot(x2, wv, preferred_element_type=jnp.float32) + bv
             ).reshape(B, N_PATCH, EMBED)

        attn = jnp.zeros((BN, EMBED), jnp.float32)
        for h in range(TRANS_HEAD_NB):              # static unroll (4 heads)
            lo = h * HEAD_DIM
            qh = q[:, :, lo:lo + HEAD_DIM]          # static 8-lane views
            kh = k[:, :, lo:lo + HEAD_DIM]
            vh = v[:, :, lo:lo + HEAD_DIM]
            s = jnp.einsum('bnd,bmd->bnm', qh, kh,
                           preferred_element_type=jnp.float32) * scale
            # kept for numeric safety (optional per review; cheap 8-lane reduce)
            s = s - jnp.max(s, axis=-1, keepdims=True)
            e = jnp.exp(s)
            p = e * pl.reciprocal(jnp.sum(e, axis=-1, keepdims=True), approx=True)
            oh = jnp.einsum('bnm,bmd->bnd', p, vh,
                            preferred_element_type=jnp.float32)
            oh = oh.reshape(BN, HEAD_DIM)
            # fold the head concat into the output projection: sum_h oh @ Wo_h
            wo_h = layers_ref[l, R_WO + lo:R_WO + lo + HEAD_DIM, :EMBED]
            attn = attn + jnp.dot(oh, wo_h, preferred_element_type=jnp.float32)
        attn = attn + layers_ref[l, R_BO:R_BO + 1, :EMBED]

        y = _layer_norm(x2 + attn,
                        layers_ref[l, R_G1:R_G1 + 1, :EMBED],
                        layers_ref[l, R_BE1:R_BE1 + 1, :EMBED])

        w1 = layers_ref[l, R_W1:R_W1 + EMBED, :TRANS_HIDDEN_NB]
        w2 = layers_ref[l, R_W2:R_W2 + TRANS_HIDDEN_NB, :EMBED]
        ff = jnp.maximum(
            jnp.dot(y, w1, preferred_element_type=jnp.float32)
            + layers_ref[l, R_B1:R_B1 + 1, :TRANS_HIDDEN_NB], 0.0)
        ff = (jnp.dot(ff, w2, preferred_element_type=jnp.float32)
              + layers_ref[l, R_B2:R_B2 + 1, :EMBED])
        x2 = _layer_norm(y + ff,
                         layers_ref[l, R_G2:R_G2 + 1, :EMBED],
                         layers_ref[l, R_BE2:R_BE2 + 1, :EMBED])

    # --- head: mean over patches -> F.normalize(p=2) -> class_fc -> softmax
    pooled = jnp.mean(x2.reshape(B, N_PATCH, EMBED), axis=1)          # (B, E)
    ss = jnp.sum(pooled * pooled, axis=-1, keepdims=True)
    pooled = pooled * jax.lax.rsqrt(jnp.maximum(ss, 1e-24))           # eps=1e-12
    wc = const_ref[R_WC:R_WC + EMBED, :]                              # (E, 128)
    bc = const_ref[R_BC:R_BC + 1, :]                                  # (1, 128)
    logits = jnp.dot(pooled, wc, preferred_element_type=jnp.float32) + bc
    logits = logits - jnp.max(logits, axis=-1, keepdims=True)
    e = jnp.exp(logits)                       # padded cols (bias -1e30) -> exp==0
    o_ref[...] = e / jnp.sum(e, axis=-1, keepdims=True)   # exact: rows sum to 1


# ----------------------------- wrapper ----------------------------------------
def vit_forward(x_signal, packed):
    B = x_signal.shape[0]
    block_b = B if B <= MAX_BLOCK_B else MAX_BLOCK_B
    n_blocks = -(-B // block_b)
    b_pad = n_blocks * block_b
    if b_pad != B:
        x_signal = jnp.concatenate(
            [x_signal, jnp.zeros((b_pad - B, SIGNAL_LENGTH), x_signal.dtype)], 0)
    # L % W == 0 -> EmbeddingPatches zero-padding branch is a no-op; row-major
    # patchify == NCW Conv1d with C=1, kernel=stride=W.
    patches = x_signal.reshape(b_pad * N_PATCH, WINDOW_SIZE)

    out_pad = pl.pallas_call(
        vit_fused_kernel,
        out_shape=jax.ShapeDtypeStruct((b_pad, PAD_CLASSES), jnp.float32),
        grid=(n_blocks,),
        in_specs=[
            pl.BlockSpec((block_b * N_PATCH, WINDOW_SIZE), lambda i: (i, 0)),
            pl.BlockSpec((CONST_ROWS, PAD_CLASSES), lambda i: (0, 0)),
            pl.BlockSpec((TRANS_LAYER_NB, LAYER_ROWS, PAD_CLASSES),
                         lambda i: (0, 0, 0)),
        ],
        out_specs=pl.BlockSpec((block_b, PAD_CLASSES), lambda i: (i, 0)),
        compiler_params=pltpu.CompilerParams(
            dimension_semantics=("parallel",)),     # both TCs usable on v7x
    )(patches, packed["const"], packed["layers"])
    return out_pad[:B, :NUM_DEV]            # drop pad batch rows + padded classes


# ----------------------------- parameter init / packing ------------------------
def init_raw_params(key):
    def nrm(k, shape, scale=0.05):
        return scale * jax.random.normal(k, shape, jnp.float32)

    L, E, D, FF, H = TRANS_LAYER_NB, EMBED, HEAD_DIM, TRANS_HIDDEN_NB, TRANS_HEAD_NB
    keys = iter(jax.random.split(key, 32))
    # NOTE: all weights stored pre-transposed for right-multiplication (PyTorch
    # checkpoints store (out, in); transpose when loading real weights).
    return {
        "w_patch": nrm(next(keys), (WINDOW_SIZE, E)),  # Conv1d(E,1,W) weight^T
        "b_patch": nrm(next(keys), (1, E)),
        "pos": nrm(next(keys), (N_PATCH, E), 1.0),     # torch.randn pos embedding
        "wq": nrm(next(keys), (L, E, E)),              # merged per-layer proj^T
        "bq": nrm(next(keys), (L, 1, E)),
        "wk": nrm(next(keys), (L, E, E)),
        "bk": nrm(next(keys), (L, 1, E)),
        "wv": nrm(next(keys), (L, E, E)),
        "bv": nrm(next(keys), (L, 1, E)),
        "wo": nrm(next(keys), (L, E, E)),              # out_proj^T (head-stacked rows)
        "bo": nrm(next(keys), (L, 1, E)),
        "g1": jnp.ones((L, 1, E), jnp.float32),
        "be1": jnp.zeros((L, 1, E), jnp.float32),
        "w1": nrm(next(keys), (L, E, FF)),
        "b1": nrm(next(keys), (L, 1, FF)),
        "w2": nrm(next(keys), (L, FF, E)),
        "b2": nrm(next(keys), (L, 1, E)),
        "g2": jnp.ones((L, 1, E), jnp.float32),
        "be2": jnp.zeros((L, 1, E), jnp.float32),
        "wc": nrm(next(keys), (E, NUM_DEV)),           # class_fc weight^T
        "bc": nrm(next(keys), (1, NUM_DEV)),
    }


def pack_params(raw):
    """Pack all parameters into two lane-dense fp32 slabs (2 DMAs per call)."""
    const = jnp.zeros((CONST_ROWS, PAD_CLASSES), jnp.float32)
    const = const.at[R_WPATCH:R_WPATCH + WINDOW_SIZE, :EMBED].set(raw["w_patch"])
    const = const.at[R_POS:R_POS + N_PATCH, :EMBED].set(raw["pos"])
    const = const.at[R_WC:R_WC + EMBED, :NUM_DEV].set(raw["wc"])     # zero-padded
    const = const.at[R_BPATCH, :EMBED].set(raw["b_patch"].reshape(EMBED))
    bc_row = jnp.full((PAD_CLASSES,), -1e30, jnp.float32)
    bc_row = bc_row.at[:NUM_DEV].set(raw["bc"].reshape(NUM_DEV))     # -1e30 padded
    const = const.at[R_BC, :].set(bc_row)

    layers = jnp.zeros((TRANS_LAYER_NB, LAYER_ROWS, PAD_CLASSES), jnp.float32)
    for l in range(TRANS_LAYER_NB):
        layers = layers.at[l, R_WQ:R_WQ + EMBED, :EMBED].set(raw["wq"][l])
        layers = layers.at[l, R_WK:R_WK + EMBED, :EMBED].set(raw["wk"][l])
        layers = layers.at[l, R_WV:R_WV + EMBED, :EMBED].set(raw["wv"][l])
        layers = layers.at[l, R_WO:R_WO + EMBED, :EMBED].set(raw["wo"][l])
        layers = layers.at[l, R_W1:R_W1 + EMBED, :TRANS_HIDDEN_NB].set(raw["w1"][l])
        layers = layers.at[l, R_W2:R_W2 + TRANS_HIDDEN_NB, :EMBED].set(raw["w2"][l])
        layers = layers.at[l, R_BQ, :EMBED].set(raw["bq"][l].reshape(EMBED))
        layers = layers.at[l, R_BK, :EMBED].set(raw["bk"][l].reshape(EMBED))
        layers = layers.at[l, R_BV, :EMBED].set(raw["bv"][l].reshape(EMBED))
        layers = layers.at[l, R_BO, :EMBED].set(raw["bo"][l].reshape(EMBED))
        layers = layers.at[l, R_B1, :TRANS_HIDDEN_NB].set(
            raw["b1"][l].reshape(TRANS_HIDDEN_NB))
        layers = layers.at[l, R_B2, :EMBED].set(raw["b2"][l].reshape(EMBED))
        layers = layers.at[l, R_G1, :EMBED].set(raw["g1"][l].reshape(EMBED))
        layers = layers.at[l, R_BE1, :EMBED].set(raw["be1"][l].reshape(EMBED))
        layers = layers.at[l, R_G2, :EMBED].set(raw["g2"][l].reshape(EMBED))
        layers = layers.at[l, R_BE2, :EMBED].set(raw["be2"][l].reshape(EMBED))
    return {"const": const, "layers": layers}


# TODO(synk): ArcFace head, BatchNorm feature_norm, dropout and the spectrogram
# input branch are not on the chosen forward path (arcface=False,
# feature_norm='identity', input_type='signal', eval mode); mlp_head is unused
# by ViT.forward.

if __name__ == "__main__":
    key = jax.random.PRNGKey(0)
    pkey, xkey = jax.random.split(key)
    packed = pack_params(init_raw_params(pkey))
    x = jax.random.normal(xkey, (BATCH, SIGNAL_LENGTH), jnp.float32)

    out = jax.jit(vit_forward)(x, packed)
    out = jax.block_until_ready(out)

    assert out.shape == (BATCH, NUM_DEV)
    assert bool(jnp.all(jnp.isfinite(out)))
    # softmax rows should sum to ~1 (padded classes contribute exactly 0)
    assert bool(jnp.allclose(jnp.sum(out, axis=1), 1.0, atol=1e-4))
    print("KERNEL_OK")
</pallas_src>

<mosaic_0001>
module attributes {stable_mosaic.version = 11 : i64} {
  func.func @vit_fused_kernel(%arg0: i32, %arg1: memref<16x16xf32, #tpu.memory_space<vmem>>, %arg2: memref<64x128xf32, #tpu.memory_space<vmem>>, %arg3: memref<2x240x128xf32, #tpu.memory_space<vmem>>, %arg4: memref<2x128xf32, #tpu.memory_space<vmem>>) attributes {dimension_semantics = [#tpu.dimension_semantics<parallel>], iteration_bounds = array<i64: 1>, scalar_prefetch = 0 : i64, scratch_operands = 0 : i64, tpu.core_type = #tpu.core_type<tc>, window_params = [{transform_indices = @transform_0, window_bounds = array<i64: 16, 16>}, {pipeline_mode = #tpu.pipeline_mode<synchronous>, transform_indices = @transform_1, window_bounds = array<i64: 64, 128>}, {pipeline_mode = #tpu.pipeline_mode<synchronous>, transform_indices = @transform_2, window_bounds = array<i64: 2, 240, 128>}, {transform_indices = @transform_3, window_bounds = array<i64: 2, 128>}]} {
    %cst = arith.constant 8.000000e+00 : f32
    %0 = math.sqrt %cst : f32
    %cst_0 = arith.constant 1.000000e+00 : f32
    %1 = arith.divf %cst_0, %0 : f32
    %c0 = arith.constant 0 : index
    %c0_1 = arith.constant 0 : index
    %2 = vector.load %arg2[%c0, %c0_1] : memref<64x128xf32, #tpu.memory_space<vmem>>, vector<16x32xf32>
    %c56 = arith.constant 56 : index
    %c0_2 = arith.constant 0 : index
    %3 = vector.load %arg2[%c56, %c0_2] : memref<64x128xf32, #tpu.memory_space<vmem>>, vector<1x32xf32>
    %c0_3 = arith.constant 0 : index
    %c0_4 = arith.constant 0 : index
    %4 = vector.load %arg1[%c0_3, %c0_4] : memref<16x16xf32, #tpu.memory_space<vmem>>, vector<16x16xf32>
    %cst_5 = arith.constant dense<0.000000e+00> : vector<16x32xf32>
    %5 = tpu.matmul %4, %2, %cst_5 {dimension_numbers = #tpu.dot_dimension_numbers<[1], [0], [0], [1], [0, 0, 1, 1], [], []>} : vector<16x16xf32>, vector<16x32xf32>, vector<16x32xf32> -> vector<16x32xf32>
    %6 = vector.broadcast %3 : vector<1x32xf32> to vector<16x32xf32>
    %7 = arith.addf %5, %6 : vector<16x32xf32>
    %c16 = arith.constant 16 : index
    %c0_6 = arith.constant 0 : index
    %8 = vector.load %arg2[%c16, %c0_6] : memref<64x128xf32, #tpu.memory_space<vmem>>, vector<8x32xf32>
    %9 = vector.shape_cast %7 : vector<16x32xf32> to vector<2x8x32xf32>
    %10 = vector.shape_cast %8 : vector<8x32xf32> to vector<1x8x32xf32>
    %11 = vector.broadcast %10 : vector<1x8x32xf32> to vector<2x8x32xf32>
    %12 = arith.addf %9, %11 : vector<2x8x32xf32>
    %13 = vector.shape_cast %12 : vector<2x8x32xf32> to vector<16x32xf32>
    %c0_7 = arith.constant 0 : index
    %c0_8 = arith.constant 0 : index
    %c0_9 = arith.constant 0 : index
    %14 = vector.load %arg3[%c0_7, %c0_8, %c0_9] : memref<2x240x128xf32, #tpu.memory_space<vmem>>, vector<1x32x32xf32>
    %15 = vector.shape_cast %14 : vector<1x32x32xf32> to vector<32x32xf32>
    %c0_10 = arith.constant 0 : index
    %c32 = arith.constant 32 : index
    %c0_11 = arith.constant 0 : index
    %16 = vector.load %arg3[%c0_10, %c32, %c0_11] : memref<2x240x128xf32, #tpu.memory_space<vmem>>, vector<1x32x32xf32>
    %17 = vector.shape_cast %16 : vector<1x32x32xf32> to vector<32x32xf32>
    %c0_12 = arith.constant 0 : index
    %c64 = arith.constant 64 : index
    %c0_13 = arith.constant 0 : index
    %18 = vector.load %arg3[%c0_12, %c64, %c0_13] : memref<2x240x128xf32, #tpu.memory_space<vmem>>, vector<1x32x32xf32>
    %19 = vector.shape_cast %18 : vector<1x32x32xf32> to vector<32x32xf32>
    %c0_14 = arith.constant 0 : index
    %c224 = arith.constant 224 : index
    %c0_15 = arith.constant 0 : index
    %20 = vector.load %arg3[%c0_14, %c224, %c0_15] : memref<2x240x128xf32, #tpu.memory_space<vmem>>, vector<1x1x32xf32>
    %21 = vector.shape_cast %20 : vector<1x1x32xf32> to vector<1x32xf32>
    %c0_16 = arith.constant 0 : index
    %c225 = arith.constant 225 : index
    %c0_17 = arith.constant 0 : index
    %22 = vector.load %arg3[%c0_16, %c225, %c0_17] : memref<2x240x128xf32, #tpu.memory_space<vmem>>, vector<1x1x32xf32>
    %23 = vector.shape_cast %22 : vector<1x1x32xf32> to vector<1x32xf32>
    %c0_18 = arith.constant 0 : index
    %c226 = arith.constant 226 : index
    %c0_19 = arith.constant 0 : index
    %24 = vector.load %arg3[%c0_18, %c226, %c0_19] : memref<2x240x128xf32, #tpu.memory_space<vmem>>, vector<1x1x32xf32>
    %25 = vector.shape_cast %24 : vector<1x1x32xf32> to vector<1x32xf32>
    %cst_20 = arith.constant dense<0.000000e+00> : vector<16x32xf32>
    %26 = tpu.matmul %13, %15, %cst_20 {dimension_numbers = #tpu.dot_dimension_numbers<[1], [0], [0], [1], [0, 0, 1, 1], [], []>} : vector<16x32xf32>, vector<32x32xf32>, vector<16x32xf32> -> vector<16x32xf32>
    %27 = vector.broadcast %21 : vector<1x32xf32> to vector<16x32xf32>
    %28 = arith.addf %26, %27 : vector<16x32xf32>
    %29 = vector.shape_cast %28 : vector<16x32xf32> to vector<2x8x32xf32>
    %cst_21 = arith.constant dense<0.000000e+00> : vector<16x32xf32>
    %30 = tpu.matmul %13, %17, %cst_21 {dimension_numbers = #tpu.dot_dimension_numbers<[1], [0], [0], [1], [0, 0, 1, 1], [], []>} : vector<16x32xf32>, vector<32x32xf32>, vector<16x32xf32> -> vector<16x32xf32>
    %31 = vector.broadcast %23 : vector<1x32xf32> to vector<16x32xf32>
    %32 = arith.addf %30, %31 : vector<16x32xf32>
    %33 = vector.shape_cast %32 : vector<16x32xf32> to vector<2x8x32xf32>
    %cst_22 = arith.constant dense<0.000000e+00> : vector<16x32xf32>
    %34 = tpu.matmul %13, %19, %cst_22 {dimension_numbers = #tpu.dot_dimension_numbers<[1], [0], [0], [1], [0, 0, 1, 1], [], []>} : vector<16x32xf32>, vector<32x32xf32>, vector<16x32xf32> -> vector<16x32xf32>
    %35 = vector.broadcast %25 : vector<1x32xf32> to vector<16x32xf32>
    %36 = arith.addf %34, %35 : vector<16x32xf32>
    %37 = vector.shape_cast %36 : vector<16x32xf32> to vector<2x8x32xf32>
    %cst_23 = arith.constant 0.000000e+00 : f32
    %38 = vector.broadcast %cst_23 : f32 to vector<16x32xf32>
    %39 = vector.extract_strided_slice %29 {offsets = [0, 0, 0], sizes = [2, 8, 8], strides = [1, 1, 1]} : vector<2x8x32xf32> to vector<2x8x8xf32>
    %40 = vector.extract_strided_slice %33 {offsets = [0, 0, 0], sizes = [2, 8, 8], strides = [1, 1, 1]} : vector<2x8x32xf32> to vector<2x8x8xf32>
    %41 = vector.extract_strided_slice %37 {offsets = [0, 0, 0], sizes = [2, 8, 8], strides = [1, 1, 1]} : vector<2x8x32xf32> to vector<2x8x8xf32>
    "tpu.trace_start"() <{level = 10 : i32, message = "bnd,bmd->bnm"}> : () -> ()
    %cst_24 = arith.constant dense<0.000000e+00> : vector<2x8x8xf32>
    %42 = tpu.matmul %39, %40, %cst_24 {dimension_numbers = #tpu.dot_dimension_numbers<[2], [2], [1], [1], [0, 0, 0, 1, 1, 1], [0], [0]>} : vector<2x8x8xf32>, vector<2x8x8xf32>, vector<2x8x8xf32> -> vector<2x8x8xf32>
    "tpu.trace_stop"() : () -> ()
    %43 = vector.broadcast %1 : f32 to vector<2x8x8xf32>
    %44 = arith.mulf %42, %43 : vector<2x8x8xf32>
    %cst_25 = arith.constant dense<0xFF800000> : vector<2x8xf32>
    %45 = vector.multi_reduction <maximumf>, %44, %cst_25 [2] : vector<2x8x8xf32> to vector<2x8xf32>
    %46 = vector.shape_cast %45 : vector<2x8xf32> to vector<2x8x1xf32>
    %47 = vector.broadcast %46 : vector<2x8x1xf32> to vector<2x8x8xf32>
    %48 = arith.subf %44, %47 : vector<2x8x8xf32>
    %49 = math.exp %48 : vector<2x8x8xf32>
    %cst_26 = arith.constant dense<0.000000e+00> : vector<2x8xf32>
    %50 = vector.multi_reduction <add>, %49, %cst_26 [2] : vector<2x8x8xf32> to vector<2x8xf32>
    %51 = vector.shape_cast %50 : vector<2x8xf32> to vector<2x8x1xf32>
    %52 = tpu.reciprocal %51 {approx = true} : vector<2x8x1xf32> -> vector<2x8x1xf32>
    %53 = vector.broadcast %52 : vector<2x8x1xf32> to vector<2x8x8xf32>
    %54 = arith.mulf %49, %53 : vector<2x8x8xf32>
    "tpu.trace_start"() <{level = 10 : i32, message = "bnm,bmd->bnd"}> : () -> ()
    %cst_27 = arith.constant dense<0.000000e+00> : vector<2x8x8xf32>
    %55 = tpu.matmul %54, %41, %cst_27 {dimension_numbers = #tpu.dot_dimension_numbers<[2], [1], [1], [2], [0, 0, 0, 1, 1, 2], [0], [0]>} : vector<2x8x8xf32>, vector<2x8x8xf32>, vector<2x8x8xf32> -> vector<2x8x8xf32>
    "tpu.trace_stop"() : () -> ()
    %56 = vector.shape_cast %55 : vector<2x8x8xf32> to vector<16x8xf32>
    %c0_28 = arith.constant 0 : index
    %c96 = arith.constant 96 : index
    %c0_29 = arith.constant 0 : index
    %57 = vector.load %arg3[%c0_28, %c96, %c0_29] : memref<2x240x128xf32, #tpu.memory_space<vmem>>, vector<1x8x32xf32>
    %58 = vector.shape_cast %57 : vector<1x8x32xf32> to vector<8x32xf32>
    %cst_30 = arith.constant dense<0.000000e+00> : vector<16x32xf32>
    %59 = tpu.matmul %56, %58, %cst_30 {dimension_numbers = #tpu.dot_dimension_numbers<[1], [0], [0], [1], [0, 0, 1, 1], [], []>} : vector<16x8xf32>, vector<8x32xf32>, vector<16x32xf32> -> vector<16x32xf32>
    %60 = arith.addf %38, %59 : vector<16x32xf32>
    %61 = vector.extract_strided_slice %29 {offsets = [0, 0, 8], sizes = [2, 8, 8], strides = [1, 1, 1]} : vector<2x8x32xf32> to vector<2x8x8xf32>
    %62 = vector.extract_strided_slice %33 {offsets = [0, 0, 8], sizes = [2, 8, 8], strides = [1, 1, 1]} : vector<2x8x32xf32> to vector<2x8x8xf32>
    %63 = vector.extract_strided_slice %37 {offsets = [0, 0, 8], sizes = [2, 8, 8], strides = [1, 1, 1]} : vector<2x8x32xf32> to vector<2x8x8xf32>
    "tpu.trace_start"() <{level = 10 : i32, message = "bnd,bmd->bnm"}> : () -> ()
    %cst_31 = arith.constant dense<0.000000e+00> : vector<2x8x8xf32>
    %64 = tpu.matmul %61, %62, %cst_31 {dimension_numbers = #tpu.dot_dimension_numbers<[2], [2], [1], [1], [0, 0, 0, 1, 1, 1], [0], [0]>} : vector<2x8x8xf32>, vector<2x8x8xf32>, vector<2x8x8xf32> -> vector<2x8x8xf32>
    "tpu.trace_stop"() : () -> ()
    %65 = vector.broadcast %1 : f32 to vector<2x8x8xf32>
    %66 = arith.mulf %64, %65 : vector<2x8x8xf32>
    %cst_32 = arith.constant dense<0xFF800000> : vector<2x8xf32>
    %67 = vector.multi_reduction <maximumf>, %66, %cst_32 [2] : vector<2x8x8xf32> to vector<2x8xf32>
    %68 = vector.shape_cast %67 : vector<2x8xf32> to vector<2x8x1xf32>
    %69 = vector.broadcast %68 : vector<2x8x1xf32> to vector<2x8x8xf32>
    %70 = arith.subf %66, %69 : vector<2x8x8xf32>
    %71 = math.exp %70 : vector<2x8x8xf32>
    %cst_33 = arith.constant dense<0.000000e+00> : vector<2x8xf32>
    %72 = vector.multi_reduction <add>, %71, %cst_33 [2] : vector<2x8x8xf32> to vector<2x8xf32>
    %73 = vector.shape_cast %72 : vector<2x8xf32> to vector<2x8x1xf32>
    %74 = tpu.reciprocal %73 {approx = true} : vector<2x8x1xf32> -> vector<2x8x1xf32>
    %75 = vector.broadcast %74 : vector<2x8x1xf32> to vector<2x8x8xf32>
    %76 = arith.mulf %71, %75 : vector<2x8x8xf32>
    "tpu.trace_start"() <{level = 10 : i32, message = "bnm,bmd->bnd"}> : () -> ()
    %cst_34 = arith.constant dense<0.000000e+00> : vector<2x8x8xf32>
    %77 = tpu.matmul %76, %63, %cst_34 {dimension_numbers = #tpu.dot_dimension_numbers<[2], [1], [1], [2], [0, 0, 0, 1, 1, 2], [0], [0]>} : vector<2x8x8xf32>, vector<2x8x8xf32>, vector<2x8x8xf32> -> vector<2x8x8xf32>
    "tpu.trace_stop"() : () -> ()
    %78 = vector.shape_cast %77 : vector<2x8x8xf32> to vector<16x8xf32>
    %c0_35 = arith.constant 0 : index
    %c104 = arith.constant 104 : index
    %c0_36 = arith.constant 0 : index
    %79 = vector.load %arg3[%c0_35, %c104, %c0_36] : memref<2x240x128xf32, #tpu.memory_space<vmem>>, vector<1x8x32xf32>
    %80 = vector.shape_cast %79 : vector<1x8x32xf32> to vector<8x32xf32>
    %cst_37 = arith.constant dense<0.000000e+00> : vector<16x32xf32>
    %81 = tpu.matmul %78, %80, %cst_37 {dimension_numbers = #tpu.dot_dimension_numbers<[1], [0], [0], [1], [0, 0, 1, 1], [], []>} : vector<16x8xf32>, vector<8x32xf32>, vector<16x32xf32> -> vector<16x32xf32>
    %82 = arith.addf %60, %81 : vector<16x32xf32>
    %83 = vector.extract_strided_slice %29 {offsets = [0, 0, 16], sizes = [2, 8, 8], strides = [1, 1, 1]} : vector<2x8x32xf32> to vector<2x8x8xf32>
    %84 = vector.extract_strided_slice %33 {offsets = [0, 0, 16], sizes = [2, 8, 8], strides = [1, 1, 1]} : vector<2x8x32xf32> to vector<2x8x8xf32>
    %85 = vector.extract_strided_slice %37 {offsets = [0, 0, 16], sizes = [2, 8, 8], strides = [1, 1, 1]} : vector<2x8x32xf32> to vector<2x8x8xf32>
    "tpu.trace_start"() <{level = 10 : i32, message = "bnd,bmd->bnm"}> : () -> ()
    %cst_38 = arith.constant dense<0.000000e+00> : vector<2x8x8xf32>
    %86 = tpu.matmul %83, %84, %cst_38 {dimension_numbers = #tpu.dot_dimension_numbers<[2], [2], [1], [1], [0, 0, 0, 1, 1, 1], [0], [0]>} : vector<2x8x8xf32>, vector<2x8x8xf32>, vector<2x8x8xf32> -> vector<2x8x8xf32>
    "tpu.trace_stop"() : () -> ()
    %87 = vector.broadcast %1 : f32 to vector<2x8x8xf32>
    %88 = arith.mulf %86, %87 : vector<2x8x8xf32>
    %cst_39 = arith.constant dense<0xFF800000> : vector<2x8xf32>
    %89 = vector.multi_reduction <maximumf>, %88, %cst_39 [2] : vector<2x8x8xf32> to vector<2x8xf32>
    %90 = vector.shape_cast %89 : vector<2x8xf32> to vector<2x8x1xf32>
    %91 = vector.broadcast %90 : vector<2x8x1xf32> to vector<2x8x8xf32>
    %92 = arith.subf %88, %91 : vector<2x8x8xf32>
    %93 = math.exp %92 : vector<2x8x8xf32>
    %cst_40 = arith.constant dense<0.000000e+00> : vector<2x8xf32>
    %94 = vector.multi_reduction <add>, %93, %cst_40 [2] : vector<2x8x8xf32> to vector<2x8xf32>
    %95 = vector.shape_cast %94 : vector<2x8xf32> to vector<2x8x1xf32>
    %96 = tpu.reciprocal %95 {approx = true} : vector<2x8x1xf32> -> vector<2x8x1xf32>
    %97 = vector.broadcast %96 : vector<2x8x1xf32> to vector<2x8x8xf32>
    %98 = arith.mulf %93, %97 : vector<2x8x8xf32>
    "tpu.trace_start"() <{level = 10 : i32, message = "bnm,bmd->bnd"}> : () -> ()
    %cst_41 = arith.constant dense<0.000000e+00> : vector<2x8x8xf32>
    %99 = tpu.matmul %98, %85, %cst_41 {dimension_numbers = #tpu.dot_dimension_numbers<[2], [1], [1], [2], [0, 0, 0, 1, 1, 2], [0], [0]>} : vector<2x8x8xf32>, vector<2x8x8xf32>, vector<2x8x8xf32> -> vector<2x8x8xf32>
    "tpu.trace_stop"() : () -> ()
    %100 = vector.shape_cast %99 : vector<2x8x8xf32> to vector<16x8xf32>
    %c0_42 = arith.constant 0 : index
    %c112 = arith.constant 112 : index
    %c0_43 = arith.constant 0 : index
    %101 = vector.load %arg3[%c0_42, %c112, %c0_43] : memref<2x240x128xf32, #tpu.memory_space<vmem>>, vector<1x8x32xf32>
    %102 = vector.shape_cast %101 : vector<1x8x32xf32> to vector<8x32xf32>
    %cst_44 = arith.constant dense<0.000000e+00> : vector<16x32xf32>
    %103 = tpu.matmul %100, %102, %cst_44 {dimension_numbers = #tpu.dot_dimension_numbers<[1], [0], [0], [1], [0, 0, 1, 1], [], []>} : vector<16x8xf32>, vector<8x32xf32>, vector<16x32xf32> -> vector<16x32xf32>
    %104 = arith.addf %82, %103 : vector<16x32xf32>
    %105 = vector.extract_strided_slice %29 {offsets = [0, 0, 24], sizes = [2, 8, 8], strides = [1, 1, 1]} : vector<2x8x32xf32> to vector<2x8x8xf32>
    %106 = vector.extract_strided_slice %33 {offsets = [0, 0, 24], sizes = [2, 8, 8], strides = [1, 1, 1]} : vector<2x8x32xf32> to vector<2x8x8xf32>
    %107 = vector.extract_strided_slice %37 {offsets = [0, 0, 24], sizes = [2, 8, 8], strides = [1, 1, 1]} : vector<2x8x32xf32> to vector<2x8x8xf32>
    "tpu.trace_start"() <{level = 10 : i32, message = "bnd,bmd->bnm"}> : () -> ()
    %cst_45 = arith.constant dense<0.000000e+00> : vector<2x8x8xf32>
    %108 = tpu.matmul %105, %106, %cst_45 {dimension_numbers = #tpu.dot_dimension_numbers<[2], [2], [1], [1], [0, 0, 0, 1, 1, 1], [0], [0]>} : vector<2x8x8xf32>, vector<2x8x8xf32>, vector<2x8x8xf32> -> vector<2x8x8xf32>
    "tpu.trace_stop"() : () -> ()
    %109 = vector.broadcast %1 : f32 to vector<2x8x8xf32>
    %110 = arith.mulf %108, %109 : vector<2x8x8xf32>
    %cst_46 = arith.constant dense<0xFF800000> : vector<2x8xf32>
    %111 = vector.multi_reduction <maximumf>, %110, %cst_46 [2] : vector<2x8x8xf32> to vector<2x8xf32>
    %112 = vector.shape_cast %111 : vector<2x8xf32> to vector<2x8x1xf32>
    %113 = vector.broadcast %112 : vector<2x8x1xf32> to vector<2x8x8xf32>
    %114 = arith.subf %110, %113 : vector<2x8x8xf32>
    %115 = math.exp %114 : vector<2x8x8xf32>
    %cst_47 = arith.constant dense<0.000000e+00> : vector<2x8xf32>
    %116 = vector.multi_reduction <add>, %115, %cst_47 [2] : vector<2x8x8xf32> to vector<2x8xf32>
    %117 = vector.shape_cast %116 : vector<2x8xf32> to vector<2x8x1xf32>
    %118 = tpu.reciprocal %117 {approx = true} : vector<2x8x1xf32> -> vector<2x8x1xf32>
    %119 = vector.broadcast %118 : vector<2x8x1xf32> to vector<2x8x8xf32>
    %120 = arith.mulf %115, %119 : vector<2x8x8xf32>
    "tpu.trace_start"() <{level = 10 : i32, message = "bnm,bmd->bnd"}> : () -> ()
    %cst_48 = arith.constant dense<0.000000e+00> : vector<2x8x8xf32>
    %121 = tpu.matmul %120, %107, %cst_48 {dimension_numbers = #tpu.dot_dimension_numbers<[2], [1], [1], [2], [0, 0, 0, 1, 1, 2], [0], [0]>} : vector<2x8x8xf32>, vector<2x8x8xf32>, vector<2x8x8xf32> -> vector<2x8x8xf32>
    "tpu.trace_stop"() : () -> ()
    %122 = vector.shape_cast %121 : vector<2x8x8xf32> to vector<16x8xf32>
    %c0_49 = arith.constant 0 : index
    %c120 = arith.constant 120 : index
    %c0_50 = arith.constant 0 : index
    %123 = vector.load %arg3[%c0_49, %c120, %c0_50] : memref<2x240x128xf32, #tpu.memory_space<vmem>>, vector<1x8x32xf32>
    %124 = vector.shape_cast %123 : vector<1x8x32xf32> to vector<8x32xf32>
    %cst_51 = arith.constant dense<0.000000e+00> : vector<16x32xf32>
    %125 = tpu.matmul %122, %124, %cst_51 {dimension_numbers = #tpu.dot_dimension_numbers<[1], [0], [0], [1], [0, 0, 1, 1], [], []>} : vector<16x8xf32>, vector<8x32xf32>, vector<16x32xf32> -> vector<16x32xf32>
    %126 = arith.addf %104, %125 : vector<16x32xf32>
    %c0_52 = arith.constant 0 : index
    %c227 = arith.constant 227 : index
    %c0_53 = arith.constant 0 : index
    %127 = vector.load %arg3[%c0_52, %c227, %c0_53] : memref<2x240x128xf32, #tpu.memory_space<vmem>>, vector<1x1x32xf32>
    %128 = vector.shape_cast %127 : vector<1x1x32xf32> to vector<1x32xf32>
    %129 = vector.broadcast %128 : vector<1x32xf32> to vector<16x32xf32>
    %130 = arith.addf %126, %129 : vector<16x32xf32>
    %131 = arith.addf %13, %130 : vector<16x32xf32>
    %c0_54 = arith.constant 0 : index
    %c230 = arith.constant 230 : index
    %c0_55 = arith.constant 0 : index
    %132 = vector.load %arg3[%c0_54, %c230, %c0_55] : memref<2x240x128xf32, #tpu.memory_space<vmem>>, vector<1x1x32xf32>
    %133 = vector.shape_cast %132 : vector<1x1x32xf32> to vector<1x32xf32>
    %c0_56 = arith.constant 0 : index
    %c231 = arith.constant 231 : index
    %c0_57 = arith.constant 0 : index
    %134 = vector.load %arg3[%c0_56, %c231, %c0_57] : memref<2x240x128xf32, #tpu.memory_space<vmem>>, vector<1x1x32xf32>
    %135 = vector.shape_cast %134 : vector<1x1x32xf32> to vector<1x32xf32>
    %cst_58 = arith.constant dense<0.000000e+00> : vector<16xf32>
    %136 = vector.multi_reduction <add>, %131, %cst_58 [1] : vector<16x32xf32> to vector<16xf32>
    %137 = vector.shape_cast %136 : vector<16xf32> to vector<16x1xf32>
    %138 = arith.mulf %131, %131 : vector<16x32xf32>
    %cst_59 = arith.constant dense<0.000000e+00> : vector<16xf32>
    %139 = vector.multi_reduction <add>, %138, %cst_59 [1] : vector<16x32xf32> to vector<16xf32>
    %140 = vector.shape_cast %139 : vector<16xf32> to vector<16x1xf32>
    %cst_60 = arith.constant 3.125000e-02 : f32
    %141 = vector.broadcast %cst_60 : f32 to vector<16x1xf32>
    %142 = arith.mulf %137, %141 : vector<16x1xf32>
    %cst_61 = arith.constant 3.125000e-02 : f32
    %143 = vector.broadcast %cst_61 : f32 to vector<16x1xf32>
    %144 = arith.mulf %140, %143 : vector<16x1xf32>
    %145 = arith.mulf %142, %142 : vector<16x1xf32>
    %146 = arith.subf %144, %145 : vector<16x1xf32>
    %cst_62 = arith.constant 0.000000e+00 : f32
    %147 = vector.broadcast %cst_62 : f32 to vector<16x1xf32>
    %148 = arith.maximumf %146, %147 : vector<16x1xf32>
    %149 = vector.broadcast %142 : vector<16x1xf32> to vector<16x32xf32>
    %150 = arith.subf %131, %149 : vector<16x32xf32>
    %cst_63 = arith.constant 9.99999974E-6 : f32
    %151 = vector.broadcast %cst_63 : f32 to vector<16x1xf32>
    %152 = arith.addf %148, %151 : vector<16x1xf32>
    %153 = math.rsqrt %152 : vector<16x1xf32>
    %154 = vector.broadcast %153 : vector<16x1xf32> to vector<16x32xf32>
    %155 = arith.mulf %150, %154 : vector<16x32xf32>
    %156 = vector.broadcast %133 : vector<1x32xf32> to vector<16x32xf32>
    %157 = arith.mulf %155, %156 : vector<16x32xf32>
    %158 = vector.broadcast %135 : vector<1x32xf32> to vector<16x32xf32>
    %159 = arith.addf %157, %158 : vector<16x32xf32>
    %c0_64 = arith.constant 0 : index
    %c128 = arith.constant 128 : index
    %c0_65 = arith.constant 0 : index
    %160 = vector.load %arg3[%c0_64, %c128, %c0_65] : memref<2x240x128xf32, #tpu.memory_space<vmem>>, vector<1x32x64xf32>
    %161 = vector.shape_cast %160 : vector<1x32x64xf32> to vector<32x64xf32>
    %c0_66 = arith.constant 0 : index
    %c160 = arith.constant 160 : index
    %c0_67 = arith.constant 0 : index
    %162 = vector.load %arg3[%c0_66, %c160, %c0_67] : memref<2x240x128xf32, #tpu.memory_space<vmem>>, vector<1x64x32xf32>
    %163 = vector.shape_cast %162 : vector<1x64x32xf32> to vector<64x32xf32>
    %cst_68 = arith.constant dense<0.000000e+00> : vector<16x64xf32>
    %164 = tpu.matmul %159, %161, %cst_68 {dimension_numbers = #tpu.dot_dimension_numbers<[1], [0], [0], [1], [0, 0, 1, 1], [], []>} : vector<16x32xf32>, vector<32x64xf32>, vector<16x64xf32> -> vector<16x64xf32>
    %c0_69 = arith.constant 0 : index
    %c228 = arith.constant 228 : index
    %c0_70 = arith.constant 0 : index
    %165 = vector.load %arg3[%c0_69, %c228, %c0_70] : memref<2x240x128xf32, #tpu.memory_space<vmem>>, vector<1x1x64xf32>
    %166 = vector.shape_cast %165 : vector<1x1x64xf32> to vector<1x64xf32>
    %167 = vector.broadcast %166 : vector<1x64xf32> to vector<16x64xf32>
    %168 = arith.addf %164, %167 : vector<16x64xf32>
    %cst_71 = arith.constant 0.000000e+00 : f32
    %169 = vector.broadcast %cst_71 : f32 to vector<16x64xf32>
    %170 = arith.maximumf %168, %169 : vector<16x64xf32>
    %cst_72 = arith.constant dense<0.000000e+00> : vector<16x32xf32>
    %171 = tpu.matmul %170, %163, %cst_72 {dimension_numbers = #tpu.dot_dimension_numbers<[1], [0], [0], [1], [0, 0, 1, 1], [], []>} : vector<16x64xf32>, vector<64x32xf32>, vector<16x32xf32> -> vector<16x32xf32>
    %c0_73 = arith.constant 0 : index
    %c229 = arith.constant 229 : index
    %c0_74 = arith.constant 0 : index
    %172 = vector.load %arg3[%c0_73, %c229, %c0_74] : memref<2x240x128xf32, #tpu.memory_space<vmem>>, vector<1x1x32xf32>
    %173 = vector.shape_cast %172 : vector<1x1x32xf32> to vector<1x32xf32>
    %174 = vector.broadcast %173 : vector<1x32xf32> to vector<16x32xf32>
    %175 = arith.addf %171, %174 : vector<16x32xf32>
    %176 = arith.addf %159, %175 : vector<16x32xf32>
    %c0_75 = arith.constant 0 : index
    %c232 = arith.constant 232 : index
    %c0_76 = arith.constant 0 : index
    %177 = vector.load %arg3[%c0_75, %c232, %c0_76] : memref<2x240x128xf32, #tpu.memory_space<vmem>>, vector<1x1x32xf32>
    %178 = vector.shape_cast %177 : vector<1x1x32xf32> to vector<1x32xf32>
    %c0_77 = arith.constant 0 : index
    %c233 = arith.constant 233 : index
    %c0_78 = arith.constant 0 : index
    %179 = vector.load %arg3[%c0_77, %c233, %c0_78] : memref<2x240x128xf32, #tpu.memory_space<vmem>>, vector<1x1x32xf32>
    %180 = vector.shape_cast %179 : vector<1x1x32xf32> to vector<1x32xf32>
    %cst_79 = arith.constant dense<0.000000e+00> : vector<16xf32>
    %181 = vector.multi_reduction <add>, %176, %cst_79 [1] : vector<16x32xf32> to vector<16xf32>
    %182 = vector.shape_cast %181 : vector<16xf32> to vector<16x1xf32>
    %183 = arith.mulf %176, %176 : vector<16x32xf32>
    %cst_80 = arith.constant dense<0.000000e+00> : vector<16xf32>
    %184 = vector.multi_reduction <add>, %183, %cst_80 [1] : vector<16x32xf32> to vector<16xf32>
    %185 = vector.shape_cast %184 : vector<16xf32> to vector<16x1xf32>
    %cst_81 = arith.constant 3.125000e-02 : f32
    %186 = vector.broadcast %cst_81 : f32 to vector<16x1xf32>
    %187 = arith.mulf %182, %186 : vector<16x1xf32>
    %cst_82 = arith.constant 3.125000e-02 : f32
    %188 = vector.broadcast %cst_82 : f32 to vector<16x1xf32>
    %189 = arith.mulf %185, %188 : vector<16x1xf32>
    %190 = arith.mulf %187, %187 : vector<16x1xf32>
    %191 = arith.subf %189, %190 : vector<16x1xf32>
    %cst_83 = arith.constant 0.000000e+00 : f32
    %192 = vector.broadcast %cst_83 : f32 to vector<16x1xf32>
    %193 = arith.maximumf %191, %192 : vector<16x1xf32>
    %194 = vector.broadcast %187 : vector<16x1xf32> to vector<16x32xf32>
    %195 = arith.subf %176, %194 : vector<16x32xf32>
    %cst_84 = arith.constant 9.99999974E-6 : f32
    %196 = vector.broadcast %cst_84 : f32 to vector<16x1xf32>
    %197 = arith.addf %193, %196 : vector<16x1xf32>
    %198 = math.rsqrt %197 : vector<16x1xf32>
    %199 = vector.broadcast %198 : vector<16x1xf32> to vector<16x32xf32>
    %200 = arith.mulf %195, %199 : vector<16x32xf32>
    %201 = vector.broadcast %178 : vector<1x32xf32> to vector<16x32xf32>
    %202 = arith.mulf %200, %201 : vector<16x32xf32>
    %203 = vector.broadcast %180 : vector<1x32xf32> to vector<16x32xf32>
    %204 = arith.addf %202, %203 : vector<16x32xf32>
    %c1 = arith.constant 1 : index
    %c0_85 = arith.constant 0 : index
    %c0_86 = arith.constant 0 : index
    %205 = vector.load %arg3[%c1, %c0_85, %c0_86] : memref<2x240x128xf32, #tpu.memory_space<vmem>>, vector<1x32x32xf32>
    %206 = vector.shape_cast %205 : vector<1x32x32xf32> to vector<32x32xf32>
    %c1_87 = arith.constant 1 : index
    %c32_88 = arith.constant 32 : index
    %c0_89 = arith.constant 0 : index
    %207 = vector.load %arg3[%c1_87, %c32_88, %c0_89] : memref<2x240x128xf32, #tpu.memory_space<vmem>>, vector<1x32x32xf32>
    %208 = vector.shape_cast %207 : vector<1x32x32xf32> to vector<32x32xf32>
    %c1_90 = arith.constant 1 : index
    %c64_91 = arith.constant 64 : index
    %c0_92 = arith.constant 0 : index
    %209 = vector.load %arg3[%c1_90, %c64_91, %c0_92] : memref<2x240x128xf32, #tpu.memory_space<vmem>>, vector<1x32x32xf32>
    %210 = vector.shape_cast %209 : vector<1x32x32xf32> to vector<32x32xf32>
    %c1_93 = arith.constant 1 : index
    %c224_94 = arith.constant 224 : index
    %c0_95 = arith.constant 0 : index
    %211 = vector.load %arg3[%c1_93, %c224_94, %c0_95] : memref<2x240x128xf32, #tpu.memory_space<vmem>>, vector<1x1x32xf32>
    %212 = vector.shape_cast %211 : vector<1x1x32xf32> to vector<1x32xf32>
    %c1_96 = arith.constant 1 : index
    %c225_97 = arith.constant 225 : index
    %c0_98 = arith.constant 0 : index
    %213 = vector.load %arg3[%c1_96, %c225_97, %c0_98] : memref<2x240x128xf32, #tpu.memory_space<vmem>>, vector<1x1x32xf32>
    %214 = vector.shape_cast %213 : vector<1x1x32xf32> to vector<1x32xf32>
    %c1_99 = arith.constant 1 : index
    %c226_100 = arith.constant 226 : index
    %c0_101 = arith.constant 0 : index
    %215 = vector.load %arg3[%c1_99, %c226_100, %c0_101] : memref<2x240x128xf32, #tpu.memory_space<vmem>>, vector<1x1x32xf32>
    %216 = vector.shape_cast %215 : vector<1x1x32xf32> to vector<1x32xf32>
    %cst_102 = arith.constant dense<0.000000e+00> : vector<16x32xf32>
    %217 = tpu.matmul %204, %206, %cst_102 {dimension_numbers = #tpu.dot_dimension_numbers<[1], [0], [0], [1], [0, 0, 1, 1], [], []>} : vector<16x32xf32>, vector<32x32xf32>, vector<16x32xf32> -> vector<16x32xf32>
    %218 = vector.broadcast %212 : vector<1x32xf32> to vector<16x32xf32>
    %219 = arith.addf %217, %218 : vector<16x32xf32>
    %220 = vector.shape_cast %219 : vector<16x32xf32> to vector<2x8x32xf32>
    %cst_103 = arith.constant dense<0.000000e+00> : vector<16x32xf32>
    %221 = tpu.matmul %204, %208, %cst_103 {dimension_numbers = #tpu.dot_dimension_numbers<[1], [0], [0], [1], [0, 0, 1, 1], [], []>} : vector<16x32xf32>, vector<32x32xf32>, vector<16x32xf32> -> vector<16x32xf32>
    %222 = vector.broadcast %214 : vector<1x32xf32> to vector<16x32xf32>
    %223 = arith.addf %221, %222 : vector<16x32xf32>
    %224 = vector.shape_cast %223 : vector<16x32xf32> to vector<2x8x32xf32>
    %cst_104 = arith.constant dense<0.000000e+00> : vector<16x32xf32>
    %225 = tpu.matmul %204, %210, %cst_104 {dimension_numbers = #tpu.dot_dimension_numbers<[1], [0], [0], [1], [0, 0, 1, 1], [], []>} : vector<16x32xf32>, vector<32x32xf32>, vector<16x32xf32> -> vector<16x32xf32>
    %226 = vector.broadcast %216 : vector<1x32xf32> to vector<16x32xf32>
    %227 = arith.addf %225, %226 : vector<16x32xf32>
    %228 = vector.shape_cast %227 : vector<16x32xf32> to vector<2x8x32xf32>
    %cst_105 = arith.constant 0.000000e+00 : f32
    %229 = vector.broadcast %cst_105 : f32 to vector<16x32xf32>
    %230 = vector.extract_strided_slice %220 {offsets = [0, 0, 0], sizes = [2, 8, 8], strides = [1, 1, 1]} : vector<2x8x32xf32> to vector<2x8x8xf32>
    %231 = vector.extract_strided_slice %224 {offsets = [0, 0, 0], sizes = [2, 8, 8], strides = [1, 1, 1]} : vector<2x8x32xf32> to vector<2x8x8xf32>
    %232 = vector.extract_strided_slice %228 {offsets = [0, 0, 0], sizes = [2, 8, 8], strides = [1, 1, 1]} : vector<2x8x32xf32> to vector<2x8x8xf32>
    "tpu.trace_start"() <{level = 10 : i32, message = "bnd,bmd->bnm"}> : () -> ()
    %cst_106 = arith.constant dense<0.000000e+00> : vector<2x8x8xf32>
    %233 = tpu.matmul %230, %231, %cst_106 {dimension_numbers = #tpu.dot_dimension_numbers<[2], [2], [1], [1], [0, 0, 0, 1, 1, 1], [0], [0]>} : vector<2x8x8xf32>, vector<2x8x8xf32>, vector<2x8x8xf32> -> vector<2x8x8xf32>
    "tpu.trace_stop"() : () -> ()
    %234 = vector.broadcast %1 : f32 to vector<2x8x8xf32>
    %235 = arith.mulf %233, %234 : vector<2x8x8xf32>
    %cst_107 = arith.constant dense<0xFF800000> : vector<2x8xf32>
    %236 = vector.multi_reduction <maximumf>, %235, %cst_107 [2] : vector<2x8x8xf32> to vector<2x8xf32>
    %237 = vector.shape_cast %236 : vector<2x8xf32> to vector<2x8x1xf32>
    %238 = vector.broadcast %237 : vector<2x8x1xf32> to vector<2x8x8xf32>
    %239 = arith.subf %235, %238 : vector<2x8x8xf32>
    %240 = math.exp %239 : vector<2x8x8xf32>
    %cst_108 = arith.constant dense<0.000000e+00> : vector<2x8xf32>
    %241 = vector.multi_reduction <add>, %240, %cst_108 [2] : vector<2x8x8xf32> to vector<2x8xf32>
    %242 = vector.shape_cast %241 : vector<2x8xf32> to vector<2x8x1xf32>
    %243 = tpu.reciprocal %242 {approx = true} : vector<2x8x1xf32> -> vector<2x8x1xf32>
    %244 = vector.broadcast %243 : vector<2x8x1xf32> to vector<2x8x8xf32>
    %245 = arith.mulf %240, %244 : vector<2x8x8xf32>
    "tpu.trace_start"() <{level = 10 : i32, message = "bnm,bmd->bnd"}> : () -> ()
    %cst_109 = arith.constant dense<0.000000e+00> : vector<2x8x8xf32>
    %246 = tpu.matmul %245, %232, %cst_109 {dimension_numbers = #tpu.dot_dimension_numbers<[2], [1], [1], [2], [0, 0, 0, 1, 1, 2], [0], [0]>} : vector<2x8x8xf32>, vector<2x8x8xf32>, vector<2x8x8xf32> -> vector<2x8x8xf32>
    "tpu.trace_stop"() : () -> ()
    %247 = vector.shape_cast %246 : vector<2x8x8xf32> to vector<16x8xf32>
    %c1_110 = arith.constant 1 : index
    %c96_111 = arith.constant 96 : index
    %c0_112 = arith.constant 0 : index
    %248 = vector.load %arg3[%c1_110, %c96_111, %c0_112] : memref<2x240x128xf32, #tpu.memory_space<vmem>>, vector<1x8x32xf32>
    %249 = vector.shape_cast %248 : vector<1x8x32xf32> to vector<8x32xf32>
    %cst_113 = arith.constant dense<0.000000e+00> : vector<16x32xf32>
    %250 = tpu.matmul %247, %249, %cst_113 {dimension_numbers = #tpu.dot_dimension_numbers<[1], [0], [0], [1], [0, 0, 1, 1], [], []>} : vector<16x8xf32>, vector<8x32xf32>, vector<16x32xf32> -> vector<16x32xf32>
    %251 = arith.addf %229, %250 : vector<16x32xf32>
    %252 = vector.extract_strided_slice %220 {offsets = [0, 0, 8], sizes = [2, 8, 8], strides = [1, 1, 1]} : vector<2x8x32xf32> to vector<2x8x8xf32>
    %253 = vector.extract_strided_slice %224 {offsets = [0, 0, 8], sizes = [2, 8, 8], strides = [1, 1, 1]} : vector<2x8x32xf32> to vector<2x8x8xf32>
    %254 = vector.extract_strided_slice %228 {offsets = [0, 0, 8], sizes = [2, 8, 8], strides = [1, 1, 1]} : vector<2x8x32xf32> to vector<2x8x8xf32>
    "tpu.trace_start"() <{level = 10 : i32, message = "bnd,bmd->bnm"}> : () -> ()
    %cst_114 = arith.constant dense<0.000000e+00> : vector<2x8x8xf32>
    %255 = tpu.matmul %252, %253, %cst_114 {dimension_numbers = #tpu.dot_dimension_numbers<[2], [2], [1], [1], [0, 0, 0, 1, 1, 1], [0], [0]>} : vector<2x8x8xf32>, vector<2x8x8xf32>, vector<2x8x8xf32> -> vector<2x8x8xf32>
    "tpu.trace_stop"() : () -> ()
    %256 = vector.broadcast %1 : f32 to vector<2x8x8xf32>
    %257 = arith.mulf %255, %256 : vector<2x8x8xf32>
    %cst_115 = arith.constant dense<0xFF800000> : vector<2x8xf32>
    %258 = vector.multi_reduction <maximumf>, %257, %cst_115 [2] : vector<2x8x8xf32> to vector<2x8xf32>
    %259 = vector.shape_cast %258 : vector<2x8xf32> to vector<2x8x1xf32>
    %260 = vector.broadcast %259 : vector<2x8x1xf32> to vector<2x8x8xf32>
    %261 = arith.subf %257, %260 : vector<2x8x8xf32>
    %262 = math.exp %261 : vector<2x8x8xf32>
    %cst_116 = arith.constant dense<0.000000e+00> : vector<2x8xf32>
    %263 = vector.multi_reduction <add>, %262, %cst_116 [2] : vector<2x8x8xf32> to vector<2x8xf32>
    %264 = vector.shape_cast %263 : vector<2x8xf32> to vector<2x8x1xf32>
    %265 = tpu.reciprocal %264 {approx = true} : vector<2x8x1xf32> -> vector<2x8x1xf32>
    %266 = vector.broadcast %265 : vector<2x8x1xf32> to vector<2x8x8xf32>
    %267 = arith.mulf %262, %266 : vector<2x8x8xf32>
    "tpu.trace_start"() <{level = 10 : i32, message = "bnm,bmd->bnd"}> : () -> ()
    %cst_117 = arith.constant dense<0.000000e+00> : vector<2x8x8xf32>
    %268 = tpu.matmul %267, %254, %cst_117 {dimension_numbers = #tpu.dot_dimension_numbers<[2], [1], [1], [2], [0, 0, 0, 1, 1, 2], [0], [0]>} : vector<2x8x8xf32>, vector<2x8x8xf32>, vector<2x8x8xf32> -> vector<2x8x8xf32>
    "tpu.trace_stop"() : () -> ()
    %269 = vector.shape_cast %268 : vector<2x8x8xf32> to vector<16x8xf32>
    %c1_118 = arith.constant 1 : index
    %c104_119 = arith.constant 104 : index
    %c0_120 = arith.constant 0 : index
    %270 = vector.load %arg3[%c1_118, %c104_119, %c0_120] : memref<2x240x128xf32, #tpu.memory_space<vmem>>, vector<1x8x32xf32>
    %271 = vector.shape_cast %270 : vector<1x8x32xf32> to vector<8x32xf32>
    %cst_121 = arith.constant dense<0.000000e+00> : vector<16x32xf32>
    %272 = tpu.matmul %269, %271, %cst_121 {dimension_numbers = #tpu.dot_dimension_numbers<[1], [0], [0], [1], [0, 0, 1, 1], [], []>} : vector<16x8xf32>, vector<8x32xf32>, vector<16x32xf32> -> vector<16x32xf32>
    %273 = arith.addf %251, %272 : vector<16x32xf32>
    %274 = vector.extract_strided_slice %220 {offsets = [0, 0, 16], sizes = [2, 8, 8], strides = [1, 1, 1]} : vector<2x8x32xf32> to vector<2x8x8xf32>
    %275 = vector.extract_strided_slice %224 {offsets = [0, 0, 16], sizes = [2, 8, 8], strides = [1, 1, 1]} : vector<2x8x32xf32> to vector<2x8x8xf32>
    %276 = vector.extract_strided_slice %228 {offsets = [0, 0, 16], sizes = [2, 8, 8], strides = [1, 1, 1]} : vector<2x8x32xf32> to vector<2x8x8xf32>
    "tpu.trace_start"() <{level = 10 : i32, message = "bnd,bmd->bnm"}> : () -> ()
    %cst_122 = arith.constant dense<0.000000e+00> : vector<2x8x8xf32>
    %277 = tpu.matmul %274, %275, %cst_122 {dimension_numbers = #tpu.dot_dimension_numbers<[2], [2], [1], [1], [0, 0, 0, 1, 1, 1], [0], [0]>} : vector<2x8x8xf32>, vector<2x8x8xf32>, vector<2x8x8xf32> -> vector<2x8x8xf32>
    "tpu.trace_stop"() : () -> ()
    %278 = vector.broadcast %1 : f32 to vector<2x8x8xf32>
    %279 = arith.mulf %277, %278 : vector<2x8x8xf32>
    %cst_123 = arith.constant dense<0xFF800000> : vector<2x8xf32>
    %280 = vector.multi_reduction <maximumf>, %279, %cst_123 [2] : vector<2x8x8xf32> to vector<2x8xf32>
    %281 = vector.shape_cast %280 : vector<2x8xf32> to vector<2x8x1xf32>
    %282 = vector.broadcast %281 : vector<2x8x1xf32> to vector<2x8x8xf32>
    %283 = arith.subf %279, %282 : vector<2x8x8xf32>
    %284 = math.exp %283 : vector<2x8x8xf32>
    %cst_124 = arith.constant dense<0.000000e+00> : vector<2x8xf32>
    %285 = vector.multi_reduction <add>, %284, %cst_124 [2] : vector<2x8x8xf32> to vector<2x8xf32>
    %286 = vector.shape_cast %285 : vector<2x8xf32> to vector<2x8x1xf32>
    %287 = tpu.reciprocal %286 {approx = true} : vector<2x8x1xf32> -> vector<2x8x1xf32>
    %288 = vector.broadcast %287 : vector<2x8x1xf32> to vector<2x8x8xf32>
    %289 = arith.mulf %284, %288 : vector<2x8x8xf32>
    "tpu.trace_start"() <{level = 10 : i32, message = "bnm,bmd->bnd"}> : () -> ()
    %cst_125 = arith.constant dense<0.000000e+00> : vector<2x8x8xf32>
    %290 = tpu.matmul %289, %276, %cst_125 {dimension_numbers = #tpu.dot_dimension_numbers<[2], [1], [1], [2], [0, 0, 0, 1, 1, 2], [0], [0]>} : vector<2x8x8xf32>, vector<2x8x8xf32>, vector<2x8x8xf32> -> vector<2x8x8xf32>
    "tpu.trace_stop"() : () -> ()
    %291 = vector.shape_cast %290 : vector<2x8x8xf32> to vector<16x8xf32>
    %c1_126 = arith.constant 1 : index
    %c112_127 = arith.constant 112 : index
    %c0_128 = arith.constant 0 : index
    %292 = vector.load %arg3[%c1_126, %c112_127, %c0_128] : memref<2x240x128xf32, #tpu.memory_space<vmem>>, vector<1x8x32xf32>
    %293 = vector.shape_cast %292 : vector<1x8x32xf32> to vector<8x32xf32>
    %cst_129 = arith.constant dense<0.000000e+00> : vector<16x32xf32>
    %294 = tpu.matmul %291, %293, %cst_129 {dimension_numbers = #tpu.dot_dimension_numbers<[1], [0], [0], [1], [0, 0, 1, 1], [], []>} : vector<16x8xf32>, vector<8x32xf32>, vector<16x32xf32> -> vector<16x32xf32>
    %295 = arith.addf %273, %294 : vector<16x32xf32>
    %296 = vector.extract_strided_slice %220 {offsets = [0, 0, 24], sizes = [2, 8, 8], strides = [1, 1, 1]} : vector<2x8x32xf32> to vector<2x8x8xf32>
    %297 = vector.extract_strided_slice %224 {offsets = [0, 0, 24], sizes = [2, 8, 8], strides = [1, 1, 1]} : vector<2x8x32xf32> to vector<2x8x8xf32>
    %298 = vector.extract_strided_slice %228 {offsets = [0, 0, 24], sizes = [2, 8, 8], strides = [1, 1, 1]} : vector<2x8x32xf32> to vector<2x8x8xf32>
    "tpu.trace_start"() <{level = 10 : i32, message = "bnd,bmd->bnm"}> : () -> ()
    %cst_130 = arith.constant dense<0.000000e+00> : vector<2x8x8xf32>
    %299 = tpu.matmul %296, %297, %cst_130 {dimension_numbers = #tpu.dot_dimension_numbers<[2], [2], [1], [1], [0, 0, 0, 1, 1, 1], [0], [0]>} : vector<2x8x8xf32>, vector<2x8x8xf32>, vector<2x8x8xf32> -> vector<2x8x8xf32>
    "tpu.trace_stop"() : () -> ()
    %300 = vector.broadcast %1 : f32 to vector<2x8x8xf32>
    %301 = arith.mulf %299, %300 : vector<2x8x8xf32>
    %cst_131 = arith.constant dense<0xFF800000> : vector<2x8xf32>
    %302 = vector.multi_reduction <maximumf>, %301, %cst_131 [2] : vector<2x8x8xf32> to vector<2x8xf32>
    %303 = vector.shape_cast %302 : vector<2x8xf32> to vector<2x8x1xf32>
    %304 = vector.broadcast %303 : vector<2x8x1xf32> to vector<2x8x8xf32>
    %305 = arith.subf %301, %304 : vector<2x8x8xf32>
    %306 = math.exp %305 : vector<2x8x8xf32>
    %cst_132 = arith.constant dense<0.000000e+00> : vector<2x8xf32>
    %307 = vector.multi_reduction <add>, %306, %cst_132 [2] : vector<2x8x8xf32> to vector<2x8xf32>
    %308 = vector.shape_cast %307 : vector<2x8xf32> to vector<2x8x1xf32>
    %309 = tpu.reciprocal %308 {approx = true} : vector<2x8x1xf32> -> vector<2x8x1xf32>
    %310 = vector.broadcast %309 : vector<2x8x1xf32> to vector<2x8x8xf32>
    %311 = arith.mulf %306, %310 : vector<2x8x8xf32>
    "tpu.trace_start"() <{level = 10 : i32, message = "bnm,bmd->bnd"}> : () -> ()
    %cst_133 = arith.constant dense<0.000000e+00> : vector<2x8x8xf32>
    %312 = tpu.matmul %311, %298, %cst_133 {dimension_numbers = #tpu.dot_dimension_numbers<[2], [1], [1], [2], [0, 0, 0, 1, 1, 2], [0], [0]>} : vector<2x8x8xf32>, vector<2x8x8xf32>, vector<2x8x8xf32> -> vector<2x8x8xf32>
    "tpu.trace_stop"() : () -> ()
    %313 = vector.shape_cast %312 : vector<2x8x8xf32> to vector<16x8xf32>
    %c1_134 = arith.constant 1 : index
    %c120_135 = arith.constant 120 : index
    %c0_136 = arith.constant 0 : index
    %314 = vector.load %arg3[%c1_134, %c120_135, %c0_136] : memref<2x240x128xf32, #tpu.memory_space<vmem>>, vector<1x8x32xf32>
    %315 = vector.shape_cast %314 : vector<1x8x32xf32> to vector<8x32xf32>
    %cst_137 = arith.constant dense<0.000000e+00> : vector<16x32xf32>
    %316 = tpu.matmul %313, %315, %cst_137 {dimension_numbers = #tpu.dot_dimension_numbers<[1], [0], [0], [1], [0, 0, 1, 1], [], []>} : vector<16x8xf32>, vector<8x32xf32>, vector<16x32xf32> -> vector<16x32xf32>
    %317 = arith.addf %295, %316 : vector<16x32xf32>
    %c1_138 = arith.constant 1 : index
    %c227_139 = arith.constant 227 : index
    %c0_140 = arith.constant 0 : index
    %318 = vector.load %arg3[%c1_138, %c227_139, %c0_140] : memref<2x240x128xf32, #tpu.memory_space<vmem>>, vector<1x1x32xf32>
    %319 = vector.shape_cast %318 : vector<1x1x32xf32> to vector<1x32xf32>
    %320 = vector.broadcast %319 : vector<1x32xf32> to vector<16x32xf32>
    %321 = arith.addf %317, %320 : vector<16x32xf32>
    %322 = arith.addf %204, %321 : vector<16x32xf32>
    %c1_141 = arith.constant 1 : index
    %c230_142 = arith.constant 230 : index
    %c0_143 = arith.constant 0 : index
    %323 = vector.load %arg3[%c1_141, %c230_142, %c0_143] : memref<2x240x128xf32, #tpu.memory_space<vmem>>, vector<1x1x32xf32>
    %324 = vector.shape_cast %323 : vector<1x1x32xf32> to vector<1x32xf32>
    %c1_144 = arith.constant 1 : index
    %c231_145 = arith.constant 231 : index
    %c0_146 = arith.constant 0 : index
    %325 = vector.load %arg3[%c1_144, %c231_145, %c0_146] : memref<2x240x128xf32, #tpu.memory_space<vmem>>, vector<1x1x32xf32>
    %326 = vector.shape_cast %325 : vector<1x1x32xf32> to vector<1x32xf32>
    %cst_147 = arith.constant dense<0.000000e+00> : vector<16xf32>
    %327 = vector.multi_reduction <add>, %322, %cst_147 [1] : vector<16x32xf32> to vector<16xf32>
    %328 = vector.shape_cast %327 : vector<16xf32> to vector<16x1xf32>
    %329 = arith.mulf %322, %322 : vector<16x32xf32>
    %cst_148 = arith.constant dense<0.000000e+00> : vector<16xf32>
    %330 = vector.multi_reduction <add>, %329, %cst_148 [1] : vector<16x32xf32> to vector<16xf32>
    %331 = vector.shape_cast %330 : vector<16xf32> to vector<16x1xf32>
    %cst_149 = arith.constant 3.125000e-02 : f32
    %332 = vector.broadcast %cst_149 : f32 to vector<16x1xf32>
    %333 = arith.mulf %328, %332 : vector<16x1xf32>
    %cst_150 = arith.constant 3.125000e-02 : f32
    %334 = vector.broadcast %cst_150 : f32 to vector<16x1xf32>
    %335 = arith.mulf %331, %334 : vector<16x1xf32>
    %336 = arith.mulf %333, %333 : vector<16x1xf32>
    %337 = arith.subf %335, %336 : vector<16x1xf32>
    %cst_151 = arith.constant 0.000000e+00 : f32
    %338 = vector.broadcast %cst_151 : f32 to vector<16x1xf32>
    %339 = arith.maximumf %337, %338 : vector<16x1xf32>
    %340 = vector.broadcast %333 : vector<16x1xf32> to vector<16x32xf32>
    %341 = arith.subf %322, %340 : vector<16x32xf32>
    %cst_152 = arith.constant 9.99999974E-6 : f32
    %342 = vector.broadcast %cst_152 : f32 to vector<16x1xf32>
    %343 = arith.addf %339, %342 : vector<16x1xf32>
    %344 = math.rsqrt %343 : vector<16x1xf32>
    %345 = vector.broadcast %344 : vector<16x1xf32> to vector<16x32xf32>
    %346 = arith.mulf %341, %345 : vector<16x32xf32>
    %347 = vector.broadcast %324 : vector<1x32xf32> to vector<16x32xf32>
    %348 = arith.mulf %346, %347 : vector<16x32xf32>
    %349 = vector.broadcast %326 : vector<1x32xf32> to vector<16x32xf32>
    %350 = arith.addf %348, %349 : vector<16x32xf32>
    %c1_153 = arith.constant 1 : index
    %c128_154 = arith.constant 128 : index
    %c0_155 = arith.constant 0 : index
    %351 = vector.load %arg3[%c1_153, %c128_154, %c0_155] : memref<2x240x128xf32, #tpu.memory_space<vmem>>, vector<1x32x64xf32>
    %352 = vector.shape_cast %351 : vector<1x32x64xf32> to vector<32x64xf32>
    %c1_156 = arith.constant 1 : index
    %c160_157 = arith.constant 160 : index
    %c0_158 = arith.constant 0 : index
    %353 = vector.load %arg3[%c1_156, %c160_157, %c0_158] : memref<2x240x128xf32, #tpu.memory_space<vmem>>, vector<1x64x32xf32>
    %354 = vector.shape_cast %353 : vector<1x64x32xf32> to vector<64x32xf32>
    %cst_159 = arith.constant dense<0.000000e+00> : vector<16x64xf32>
    %355 = tpu.matmul %350, %352, %cst_159 {dimension_numbers = #tpu.dot_dimension_numbers<[1], [0], [0], [1], [0, 0, 1, 1], [], []>} : vector<16x32xf32>, vector<32x64xf32>, vector<16x64xf32> -> vector<16x64xf32>
    %c1_160 = arith.constant 1 : index
    %c228_161 = arith.constant 228 : index
    %c0_162 = arith.constant 0 : index
    %356 = vector.load %arg3[%c1_160, %c228_161, %c0_162] : memref<2x240x128xf32, #tpu.memory_space<vmem>>, vector<1x1x64xf32>
    %357 = vector.shape_cast %356 : vector<1x1x64xf32> to vector<1x64xf32>
    %358 = vector.broadcast %357 : vector<1x64xf32> to vector<16x64xf32>
    %359 = arith.addf %355, %358 : vector<16x64xf32>
    %cst_163 = arith.constant 0.000000e+00 : f32
    %360 = vector.broadcast %cst_163 : f32 to vector<16x64xf32>
    %361 = arith.maximumf %359, %360 : vector<16x64xf32>
    %cst_164 = arith.constant dense<0.000000e+00> : vector<16x32xf32>
    %362 = tpu.matmul %361, %354, %cst_164 {dimension_numbers = #tpu.dot_dimension_numbers<[1], [0], [0], [1], [0, 0, 1, 1], [], []>} : vector<16x64xf32>, vector<64x32xf32>, vector<16x32xf32> -> vector<16x32xf32>
    %c1_165 = arith.constant 1 : index
    %c229_166 = arith.constant 229 : index
    %c0_167 = arith.constant 0 : index
    %363 = vector.load %arg3[%c1_165, %c229_166, %c0_167] : memref<2x240x128xf32, #tpu.memory_space<vmem>>, vector<1x1x32xf32>
    %364 = vector.shape_cast %363 : vector<1x1x32xf32> to vector<1x32xf32>
    %365 = vector.broadcast %364 : vector<1x32xf32> to vector<16x32xf32>
    %366 = arith.addf %362, %365 : vector<16x32xf32>
    %367 = arith.addf %350, %366 : vector<16x32xf32>
    %c1_168 = arith.constant 1 : index
    %c232_169 = arith.constant 232 : index
    %c0_170 = arith.constant 0 : index
    %368 = vector.load %arg3[%c1_168, %c232_169, %c0_170] : memref<2x240x128xf32, #tpu.memory_space<vmem>>, vector<1x1x32xf32>
    %369 = vector.shape_cast %368 : vector<1x1x32xf32> to vector<1x32xf32>
    %c1_171 = arith.constant 1 : index
    %c233_172 = arith.constant 233 : index
    %c0_173 = arith.constant 0 : index
    %370 = vector.load %arg3[%c1_171, %c233_172, %c0_173] : memref<2x240x128xf32, #tpu.memory_space<vmem>>, vector<1x1x32xf32>
    %371 = vector.shape_cast %370 : vector<1x1x32xf32> to vector<1x32xf32>
    %cst_174 = arith.constant dense<0.000000e+00> : vector<16xf32>
    %372 = vector.multi_reduction <add>, %367, %cst_174 [1] : vector<16x32xf32> to vector<16xf32>
    %373 = vector.shape_cast %372 : vector<16xf32> to vector<16x1xf32>
    %374 = arith.mulf %367, %367 : vector<16x32xf32>
    %cst_175 = arith.constant dense<0.000000e+00> : vector<16xf32>
    %375 = vector.multi_reduction <add>, %374, %cst_175 [1] : vector<16x32xf32> to vector<16xf32>
    %376 = vector.shape_cast %375 : vector<16xf32> to vector<16x1xf32>
    %cst_176 = arith.constant 3.125000e-02 : f32
    %377 = vector.broadcast %cst_176 : f32 to vector<16x1xf32>
    %378 = arith.mulf %373, %377 : vector<16x1xf32>
    %cst_177 = arith.constant 3.125000e-02 : f32
    %379 = vector.broadcast %cst_177 : f32 to vector<16x1xf32>
    %380 = arith.mulf %376, %379 : vector<16x1xf32>
    %381 = arith.mulf %378, %378 : vector<16x1xf32>
    %382 = arith.subf %380, %381 : vector<16x1xf32>
    %cst_178 = arith.constant 0.000000e+00 : f32
    %383 = vector.broadcast %cst_178 : f32 to vector<16x1xf32>
    %384 = arith.maximumf %382, %383 : vector<16x1xf32>
    %385 = vector.broadcast %378 : vector<16x1xf32> to vector<16x32xf32>
    %386 = arith.subf %367, %385 : vector<16x32xf32>
    %cst_179 = arith.constant 9.99999974E-6 : f32
    %387 = vector.broadcast %cst_179 : f32 to vector<16x1xf32>
    %388 = arith.addf %384, %387 : vector<16x1xf32>
    %389 = math.rsqrt %388 : vector<16x1xf32>
    %390 = vector.broadcast %389 : vector<16x1xf32> to vector<16x32xf32>
    %391 = arith.mulf %386, %390 : vector<16x32xf32>
    %392 = vector.broadcast %369 : vector<1x32xf32> to vector<16x32xf32>
    %393 = arith.mulf %391, %392 : vector<16x32xf32>
    %394 = vector.broadcast %371 : vector<1x32xf32> to vector<16x32xf32>
    %395 = arith.addf %393, %394 : vector<16x32xf32>
    %396 = vector.shape_cast %395 : vector<16x32xf32> to vector<2x8x32xf32>
    %cst_180 = arith.constant dense<0.000000e+00> : vector<2x32xf32>
    %397 = vector.multi_reduction <add>, %396, %cst_180 [1] : vector<2x8x32xf32> to vector<2x32xf32>
    %cst_181 = arith.constant 8.000000e+00 : f32
    %398 = vector.broadcast %cst_181 : f32 to vector<2x32xf32>
    %399 = arith.divf %397, %398 : vector<2x32xf32>
    %400 = arith.mulf %399, %399 : vector<2x32xf32>
    %cst_182 = arith.constant dense<0.000000e+00> : vector<2xf32>
    %401 = vector.multi_reduction <add>, %400, %cst_182 [1] : vector<2x32xf32> to vector<2xf32>
    %402 = vector.shape_cast %401 : vector<2xf32> to vector<2x1xf32>
    %cst_183 = arith.constant 1.000000e-24 : f32
    %403 = vector.broadcast %cst_183 : f32 to vector<2x1xf32>
    %404 = arith.maximumf %402, %403 : vector<2x1xf32>
    %405 = math.rsqrt %404 : vector<2x1xf32>
    %406 = vector.broadcast %405 : vector<2x1xf32> to vector<2x32xf32>
    %407 = arith.mulf %399, %406 : vector<2x32xf32>
    %c24 = arith.constant 24 : index
    %c0_184 = arith.constant 0 : index
    %408 = vector.load %arg2[%c24, %c0_184] : memref<64x128xf32, #tpu.memory_space<vmem>>, vector<32x128xf32>
    %c57 = arith.constant 57 : index
    %c0_185 = arith.constant 0 : index
    %409 = vector.load %arg2[%c57, %c0_185] : memref<64x128xf32, #tpu.memory_space<vmem>>, vector<1x128xf32>
    %cst_186 = arith.constant dense<0.000000e+00> : vector<2x128xf32>
    %410 = tpu.matmul %407, %408, %cst_186 {dimension_numbers = #tpu.dot_dimension_numbers<[1], [0], [0], [1], [0, 0, 1, 1], [], []>} : vector<2x32xf32>, vector<32x128xf32>, vector<2x128xf32> -> vector<2x128xf32>
    %411 = vector.broadcast %409 : vector<1x128xf32> to vector<2x128xf32>
    %412 = arith.addf %410, %411 : vector<2x128xf32>
    %cst_187 = arith.constant dense<0xFF800000> : vector<2xf32>
    %413 = vector.multi_reduction <maximumf>, %412, %cst_187 [1] : vector<2x128xf32> to vector<2xf32>
    %414 = vector.shape_cast %413 : vector<2xf32> to vector<2x1xf32>
    %415 = vector.broadcast %414 : vector<2x1xf32> to vector<2x128xf32>
    %416 = arith.subf %412, %415 : vector<2x128xf32>
    %417 = math.exp %416 : vector<2x128xf32>
    %cst_188 = arith.constant dense<0.000000e+00> : vector<2xf32>
    %418 = vector.multi_reduction <add>, %417, %cst_188 [1] : vector<2x128xf32> to vector<2xf32>
    %419 = vector.shape_cast %418 : vector<2xf32> to vector<2x1xf32>
    %420 = vector.broadcast %419 : vector<2x1xf32> to vector<2x128xf32>
    %421 = arith.divf %417, %420 : vector<2x128xf32>
    %c0_189 = arith.constant 0 : index
    %c0_190 = arith.constant 0 : index
    %422 = vector.load %arg4[%c0_189, %c0_190] : memref<2x128xf32, #tpu.memory_space<vmem>>, vector<2x128xf32>
    tpu.vector_store %arg4[%c0_189, %c0_190], %421 {strides = array<i32>} : memref<2x128xf32, #tpu.memory_space<vmem>>, vector<2x128xf32>,
    return
  }
  func.func @transform_0(%arg0: i32) -> (i32, i32) {
    %c0_i32 = arith.constant 0 : i32
    %c0_i32_0 = arith.constant 0 : i32
    return %arg0, %c0_i32 : i32, i32
  }
  func.func @transform_1(%arg0: i32) -> (i32, i32) {
    %c0_i32 = arith.constant 0 : i32
    %c0_i32_0 = arith.constant 0 : i32
    %c0_i32_1 = arith.constant 0 : i32
    return %c0_i32, %c0_i32_0 : i32, i32
  }
  func.func @transform_2(%arg0: i32) -> (i32, i32, i32) {
    %c0_i32 = arith.constant 0 : i32
    %c0_i32_0 = arith.constant 0 : i32
    %c0_i32_1 = arith.constant 0 : i32
    %c0_i32_2 = arith.constant 0 : i32
    return %c0_i32, %c0_i32_0, %c0_i32_1 : i32, i32, i32
  }
  func.func @transform_3(%arg0: i32) -> (i32, i32) {
    %c0_i32 = arith.constant 0 : i32
    %c0_i32_0 = arith.constant 0 : i32
    return %arg0, %c0_i32 : i32, i32
  }
}

</mosaic_0001>

<bundles_post_ra>
// kernel: vit_forward.1
= control target key start
LH: loop header
LB: loop body
LE: loop exit
PB: predicated region body
PF: predicated region fallthrough
CT: control target
= control target key end

     0   :  { %8 = vsyncpa [#allocation3], 0  ;;  %s2716_s0 = inlined_call_operand.vmem [shape: f32[16,16], index: 0, kind: input, shape index: {}]   ;;  %s2717_s1 = inlined_call_operand.hbm [shape: f32[64,128], index: 1, kind: input, shape index: {}]   ;;  %s2718_s2 = inlined_call_operand.hbm [shape: f32[2,240,128], index: 2, kind: input, shape index: {}]   ;;  %s2719_s3 = inlined_call_operand.hbm [shape: f32[2,128], index: 3, kind: output, shape index: {}]  }
   0x1   :  { %9 = vsyncpa [#allocation6], 0 }
   0x2   :  { %10 = vsyncpa [#allocation4], 0  ;;  %s17_s14 = sshll.u32 %s2717_s1, 4  ;;  %s2380_s15 = smov [#allocation2]   ;;  %s18_s14 = int_to_ptr.hbm [resolvable:$true] %s17_s14 }
   0x3   :  { %s19_s16 = sshll.u32 %s2380_s15, 4  ;;  %s30_s19 = sshll.u32 %s2718_s2, 4  ;;  %s20_s16 = int_to_ptr.vmem [resolvable:$true] %s19_s16  ;;  %s31_s19 = int_to_ptr.hbm [resolvable:$true] %s30_s19 }
   0x4   :  { %s2381_s20 = smov 128   ;;  %s2382_s21 = smov 8  }
   0x5   :  { %25 = dma.hbm_to_vmem [thread:$0]  %s18_s14, 1024, %s20_s16, [#allocation3], %s2381_s20, %s2381_s20, %s2382_s21  }
   0x6   :  { %s2383_s22 = smov [#allocation5]  }
   0x7   :  { %s32_s23 = sshll.u32 %s2383_s22, 4  ;;  %s33_s23 = int_to_ptr.vmem [resolvable:$true] %s32_s23 }
   0x8   :  { %38 = dma.hbm_to_vmem [thread:$0]  %s31_s19, 7680, %s33_s23, [#allocation6], %s2381_s20, %s2381_s20, %s2382_s21  }
   0x9   :  { %2374 = dma.done.wait [#allocation3], 1024  }
   0xa   :  { %2375 = vsyncadd [#allocation3], 4294966272 }
   0xb   :  { %2376 = dma.done.wait [#allocation6], 7680  }
   0xc   :  { %2377 = vsyncadd [#allocation6], 4294959616  ;;  %v48_v0 = vld [vmem:[#allocation2 + $0x8] sm:$0xff]  ;;  %v47_v1 = vld [vmem:[#allocation2] sm:$0xff]  ;;  %vm53_vm0 = vcmask 130048   ;;  %vm102_vm1 = vcmask 261120  }
   0xd   :  { %74 = vmatpush.msra.mxu0 %v48_v0  ;;  %v50_v2 = vld [vmem:[%s2716_s0] sm:$0xff]  ;;  %v89_v3 = vld [vmem:[#allocation5 + $0x18] sm:$0xff]  ;;  %v51_v6 = vld [vmem:[%s2716_s0 + $0x8] sm:$0xff]  ;;  %vm180_vm2 = vcmask 64512   ;;  %s2384_s0 = smov 120   ;;  %s2385_s26 = smov 112  }
   0xe   :  { %v93_v4 = vld [vmem:[#allocation5 + $0x38] sm:$0xff]  ;;  %121 = vmatpush.msra.mxu1 %v89_v3  ;;  %v88_v7 = vld [vmem:[#allocation5 + $0x10] sm:$0xff]  ;;  %v87_v10 = vld [vmem:[#allocation5 + $0x8] sm:$0xff]  ;;  %s2386_s27 = smov 104   ;;  %vm936_vm6 = vcmask 523264   ;;  %s2388_s28 = smov [#allocation7]  }
   0xf   :  { %145 = vmatpush.msra.mxu2 %v93_v4  ;;  %v97_v5 = vld [vmem:[#allocation5 + $0x58] sm:$0xff]  ;;  %75 = vmatpush.msra.mxu0 %v47_v1  ;;  %v92_v8 = vld [vmem:[#allocation5 + $0x30] sm:$0xff]  ;;  %v91_v11 = vld [vmem:[#allocation5 + $0x28] sm:$0xff]  ;;  %s2078_s29 = sshll.u32 %s2388_s28, 4  ;;  %s2080_s5 = sshll.u32 %s2719_s3, 4  ;;  %s2079_s29 = int_to_ptr.vmem [resolvable:$true] %s2078_s29  ;;  %s2081_s5 = int_to_ptr.hbm [resolvable:$true] %s2080_s5 }
  0x10   :  { %169 = vmatpush.msra.mxu3 %v97_v5  ;;  %2091 = vmatmul.msk.f32.vlgmr.msra.gmra.mxu0 %vm53_vm0, %v50_v2  ;;  %v96_v9 = vld [vmem:[#allocation5 + $0x50] sm:$0xff]  ;;  %v95_v12 = vld [vmem:[#allocation5 + $0x48] sm:$0xff]  ;;  %v86_v13 = vld [vmem:[#allocation5] sm:$0xff] }
  0x11   :  { %122 = vmatpush.msra.mxu1 %v88_v7  ;;  %146 = vmatpush.msra.mxu2 %v92_v8  ;;  %v90_v14 = vld [vmem:[#allocation5 + $0x20] sm:$0xff]  ;;  %v2192_v16 = vld [vmem:[#allocation2 + $0x38] ss:$0 sm:$0xff]  ;;  %v83_v18 = vld [vmem:[#allocation2 + $0x10] sm:$0xff] }
  0x12   :  { %170 = vmatpush.msra.mxu3 %v96_v9  ;;  %v94_v15 = vld [vmem:[#allocation5 + $0x40] sm:$0xff] }
  0x13   :  { %123 = vmatpush.msra.mxu1 %v87_v10  ;;  %147 = vmatpush.msra.mxu2 %v91_v11  ;;  %v2194_v24 = vld [vmem:[#allocation5 + $0xe1] ss:$0 sm:$0xff]  ;;  %v2195_v25 = vld [vmem:[#allocation5 + $0xe2] ss:$0 sm:$0xff]  ;;  %v2193_v27 = vld [vmem:[#allocation5 + $0xe0] ss:$0 sm:$0xff] }
  0x14   :  { %171 = vmatpush.msra.mxu3 %v95_v12 }
  0x15   :  { %124 = vmatpush.msra.mxu1 %v86_v13  ;;  %148 = vmatpush.msra.mxu2 %v90_v14 }
  0x16   :  { %172 = vmatpush.msra.mxu3 %v94_v15 }
  0x18   :  { %2092 = vmatmul.msk.f32.gmra.mxu0 %vm53_vm0, %v51_v6  ;;  %v303_v6 = vld [vmem:[#allocation5 + $0x60] sm:$0xff] }
  0x8d   :  { %v77_v17 = vpop.f32.mrf.mxu0 }
  0x8e   :  { %v78_v19 = vadd.f32 %v2192_v16, %v77_v17 }
  0x90   :  { %v2421_v20 = vadd.f32 %v83_v18, %v78_v19 }
  0x92   :  { %2093 = vmatmul.msk.f32.vlgmr.msra.gmra.mxu1 %vm102_vm1, %v2421_v20  ;;  %2095 = vmatmul.msk.f32.vlgmr.msra.gmra.mxu2 %vm102_vm1, %v2421_v20 }
  0x93   :  { %2097 = vmatmul.msk.f32.vlgmr.msra.gmra.mxu3 %vm102_vm1, %v2421_v20 }
  0x95   :  { %v80_v21 = vpop.f32.mrf.mxu0 }
  0x96   :  { %v81_v22 = vadd.f32 %v2192_v16, %v80_v21 }
  0x98   :  { %v2429_v23 = vadd.f32 %v83_v18, %v81_v22 }
  0x9a   :  { %2096 = vmatmul.msk.f32.gmra.mxu2 %vm102_vm1, %v2429_v23  ;;  %2094 = vmatmul.msk.f32.gmra.mxu1 %vm102_vm1, %v2429_v23 }
  0x9b   :  { %2098 = vmatmul.msk.f32.gmra.mxu3 %vm102_vm1, %v2429_v23 }
 0x10f   :  { %v126_v26 = vpop.f32.mrf.mxu1 }
 0x110   :  { %v127_v32 = vadd.f32 %v2193_v27, %v126_v26 }
 0x115   :  { %v150_v28 = vpop.f32.mrf.mxu2 }
 0x116   :  { %v2437_v29 = vadd.f32 %v2194_v24, %v150_v28  ;;  %v174_v30 = vpop.f32.mrf.mxu3 }
 0x117   :  { %v2439_v31 = vadd.f32 %v2195_v25, %v174_v30  ;;  %v129_v33 = vpop.f32.mrf.mxu1 }
 0x118   :  { %306 = vrot.lane.b32.xlu0 %v2437_v29, %s2384_s0  ;;  %2099 = vmatpush.xpose.msk.msrb.mxu0 %vm180_vm2, %v2437_v29  ;;  %v2449_v37 = vadd.f32 %v2193_v27, %v129_v33 }
 0x119   :  { %275 = vmatpush.msrb.mxu2 %v2439_v31 }
 0x11b   :  { %2100 = vmatmul.msk.f32.vlgmr.msrb.gmra.mxu0 %vm180_vm2, %v127_v32 }
 0x11d   :  { %v153_v34 = vpop.f32.mrf.mxu2 }
 0x11e   :  { %v2447_v35 = vadd.f32 %v2194_v24, %v153_v34  ;;  %v177_v36 = vpop.f32.mrf.mxu3 }
 0x11f   :  { %v2451_v38 = vadd.f32 %v2195_v25, %v177_v36 }
 0x120   :  { %2101 = vmatpush.xpose.msk.msrb.mxu1 %vm180_vm2, %v2447_v35  ;;  %304 = vrot.lane.b32.xlu0 %v127_v32, %s2384_s0 }
 0x121   :  { %334 = vrot.lane.b32.xlu1 %v2447_v35, %s2384_s0  ;;  %298 = vmatpush.msrb.mxu3 %v2451_v38 }
 0x123   :  { %2102 = vmatmul.msk.f32.vlgmr.msrb.gmra.mxu1 %vm180_vm2, %v2449_v37 }
 0x129   :  { %332 = vrot.lane.b32.xlu1 %v2449_v37, %s2384_s0 }
 0x18a   :  { %v307_v39 = vpop.permute.xlu0 %306 }
 0x18b   :  { %2105 = vmatpush.xpose.msk.msra.mxu0 %vm180_vm2, %v307_v39 }
 0x192   :  { %v305_v40 = vpop.permute.xlu0 %304 }
 0x193   :  { %2106 = vmatmul.msk.f32.vlgmr.msra.gmra.mxu0 %vm180_vm2, %v305_v40  ;;  %v335_v41 = vpop.permute.xlu1 %334  ;;  %v438_v40 = vld [vmem:[#allocation5 + $0x68] sm:$0xff] }
 0x194   :  { %2107 = vmatpush.xpose.msk.msra.mxu1 %vm180_vm2, %v335_v41  ;;  %460 = vmatpush.msrb.mxu0 %v438_v40 }
 0x198   :  { %v204_v42 = vpop.f32.mrf.mxu0  ;;  %489 = vmatpush.msrb.mxu1 %v303_v6 }
 0x199   :  { %v233_v43 = vmul.f32 0.35355338, %v204_v42 }
 0x19b   :  { %v235_v44 = vsel %vm180_vm2, %v233_v43, -inf  ;;  %v333_v45 = vpop.permute.xlu1 %332 }
 0x19c   :  { %236 = vmax.xlane.f32.xlu2 %v235_v44  ;;  %2108 = vmatmul.msk.f32.vlgmr.msra.gmra.mxu1 %vm180_vm2, %v333_v45 }
 0x1a0   :  { %v230_v46 = vpop.f32.mrf.mxu1 }
 0x1a1   :  { %v234_v47 = vmul.f32 0.35355338, %v230_v46 }
 0x1a3   :  { %v238_v48 = vsel %vm180_vm2, %v234_v47, -inf }
 0x1a4   :  { %239 = vmax.xlane.f32.xlu2 %v238_v48 }
 0x20f   :  { %v237_v49 = vpop.xlane.xlu2 %236 }
 0x210   :  { %v241_v50 = vsub.f32 %v233_v43, %v237_v49  ;;  %v329_v51 = vpop.f32.mrf.mxu0 }
 0x211   :  { %v360_v52 = vmul.f32 0.35355338, %v329_v51 }
 0x212   :  { %v243_v53 = vmul.f32 1.442695, %v241_v50 }
 0x213   :  { %v362_v54 = vsel %vm180_vm2, %v360_v52, -inf }
 0x214   :  { %2214 = vpow2.f32 %v243_v53  ;;  %363 = vmax.xlane.f32.xlu0 %v362_v54 }
 0x217   :  { %v240_v55 = vpop.xlane.xlu2 %239 }
 0x218   :  { %v242_v56 = vsub.f32 %v234_v47, %v240_v55 }
 0x219   :  { %v357_v59 = vpop.f32.mrf.mxu1 }
 0x21a   :  { %v2215_v57 = vpop.eup %2214  ;;  %v245_v58 = vmul.f32 1.442695, %v242_v56  ;;  %v361_v61 = vmul.f32 0.35355338, %v357_v59 }
 0x21b   :  { %v247_v60 = vsel %vm180_vm2, %v2215_v57, 0.0 }
 0x21c   :  { %2216 = vpow2.f32 %v245_v58  ;;  %248 = vadd.xlane.f32.xlu1 %v247_v60  ;;  %v365_v62 = vsel %vm180_vm2, %v361_v61, -inf }
 0x222   :  { %v2217_v63 = vpop.eup %2216 }
 0x223   :  { %v250_v0 = vsel %vm180_vm2, %v2217_v63, 0.0 }
 0x224   :  { %366 = vmax.xlane.f32.xlu1 %v365_v62  ;;  %251 = vadd.xlane.f32.xlu2 %v250_v0 }
 0x228   :  { %497 = vrot.lane.b32.xlu0 %v127_v32, %s2385_s26 }
 0x230   :  { %527 = vrot.lane.b32.xlu0 %v2447_v35, %s2385_s26 }
 0x238   :  { %525 = vrot.lane.b32.xlu0 %v2449_v37, %s2385_s26 }
 0x23c   :  { %385 = vrot.lane.b32.xlu2 %v2439_v31, %s2384_s0 }
 0x23d   :  { %412 = vrot.lane.b32.xlu1 %v2451_v38, %s2384_s0 }
 0x240   :  { %661 = vrot.lane.b32.xlu0 %v127_v32, %s2386_s27 }
 0x245   :  { %663 = vrot.lane.b32.xlu1 %v2437_v29, %s2386_s27 }
 0x287   :  { %v364_v1 = vpop.xlane.xlu0 %363 }
 0x288   :  { %v368_v2 = vsub.f32 %v360_v52, %v364_v1 }
 0x28a   :  { %v370_v3 = vmul.f32 1.442695, %v368_v2 }
 0x28c   :  { %2218 = vpow2.f32 %v370_v3 }
 0x28f   :  { %v249_v4 = vpop.xlane.xlu1 %248 }
 0x290   :  { %2220 = vrcp.f32 %v249_v4 }
 0x292   :  { %v2219_v5 = vpop.eup %2218 }
 0x293   :  { %v374_v7 = vsel %vm180_vm2, %v2219_v5, 0.0 }
 0x294   :  { %375 = vadd.xlane.f32.xlu2 %v374_v7 }
 0x296   :  { %v2221_v8 = vpop.eup %2220 }
 0x297   :  { %v252_v9 = vpop.xlane.xlu2 %251  ;;  %v255_v10 = vmul.f32 %v2221_v8, %v2215_v57  ;;  %v367_v15 = vpop.xlane.xlu1 %366 }
 0x298   :  { %2222 = vrcp.f32 %v252_v9  ;;  %v369_v19 = vsub.f32 %v361_v61, %v367_v15 }
 0x299   :  { %2103 = vmatmul.msk.f32.vlgmr.msrb.gmra.mxu2 %vm180_vm2, %v255_v10 }
 0x29a   :  { %v498_v14 = vpop.permute.xlu0 %497  ;;  %v372_v21 = vmul.f32 1.442695, %v369_v19 }
 0x29c   :  { %2224 = vpow2.f32 %v372_v21 }
 0x29e   :  { %v2223_v11 = vpop.eup %2222 }
 0x29f   :  { %v386_v12 = vpop.permute.xlu2 %385  ;;  %v256_v13 = vmul.f32 %v2223_v11, %v2217_v63 }
 0x2a0   :  { %406 = vmatpush.msra.mxu2 %v386_v12 }
 0x2a1   :  { %2104 = vmatmul.msk.f32.vlgmr.msrb.gmra.mxu3 %vm180_vm2, %v256_v13  ;;  %v629_v13 = vld [vmem:[#allocation5 + $0x70] sm:$0xff] }
 0x2a2   :  { %v528_v17 = vpop.permute.xlu0 %527  ;;  %v2225_v22 = vpop.eup %2224  ;;  %651 = vmatpush.msra.mxu0 %v629_v13  ;;  %v897_v13 = vld [vmem:[#allocation5 + $0xc0] sm:$0xff] }
 0x2a3   :  { %v377_v24 = vsel %vm180_vm2, %v2225_v22, 0.0 }
 0x2aa   :  { %v526_v30 = vpop.permute.xlu0 %525 }
 0x2ac   :  { %499 = vrot.lane.b32.xlu2 %v2437_v29, %s2385_s26 }
 0x2af   :  { %v413_v16 = vpop.permute.xlu1 %412 }
 0x2b0   :  { %433 = vmatpush.msra.mxu3 %v413_v16 }
 0x2b2   :  { %2117 = vmatpush.xpose.msk.msrb.mxu3 %vm180_vm2, %v528_v17  ;;  %v662_v33 = vpop.permute.xlu0 %661 }
 0x2b7   :  { %v664_v18 = vpop.permute.xlu1 %663 }
 0x2b8   :  { %2123 = vmatpush.xpose.msk.msra.mxu1 %vm180_vm2, %v664_v18 }
 0x2d5   :  { %378 = vadd.xlane.f32.xlu2 %v377_v24  ;;  %v793_v24 = vld [vmem:[#allocation5 + $0x78] sm:$0xff] }
 0x2ed   :  { %577 = vrot.lane.b32.xlu2 %v2439_v31, %s2385_s26 }
 0x2f5   :  { %691 = vrot.lane.b32.xlu2 %v2447_v35, %s2386_s27 }
 0x2fd   :  { %689 = vrot.lane.b32.xlu2 %v2449_v37, %s2386_s27 }
 0x307   :  { %v376_v25 = vpop.xlane.xlu2 %375 }
 0x308   :  { %2226 = vrcp.f32 %v376_v25 }
 0x30e   :  { %v2227_v26 = vpop.eup %2226 }
 0x30f   :  { %v382_v27 = vmul.f32 %v2227_v26, %v2219_v5  ;;  %v500_v28 = vpop.permute.xlu2 %499 }
 0x310   :  { %2115 = vmatpush.xpose.msk.msrb.mxu2 %vm180_vm2, %v500_v28 }
 0x311   :  { %2109 = vmatmul.msk.f32.vlgmr.msra.gmra.mxu2 %vm180_vm2, %v382_v27 }
 0x319   :  { %2116 = vmatmul.msk.f32.vlgmr.msrb.gmra.mxu2 %vm180_vm2, %v498_v14 }
 0x31c   :  { %v277_v29 = vpop.f32.mrf.mxu2 }
 0x31d   :  { %2113 = vmatmul.msk.f32.vlgmr.msrb.gmra.mxu1 %vm180_vm2, %v277_v29 }
 0x324   :  { %v300_v32 = vpop.f32.mrf.mxu3 }
 0x325   :  { %2114 = vmatmul.msk.f32.gmra.mxu1 %vm180_vm2, %v300_v32 }
 0x32d   :  { %2124 = vmatmul.msk.f32.vlgmr.msra.gmra.mxu1 %vm180_vm2, %v662_v33 }
 0x348   :  { %v379_v34 = vpop.xlane.xlu2 %378 }
 0x349   :  { %2228 = vrcp.f32 %v379_v34 }
 0x34f   :  { %v2229_v35 = vpop.eup %2228 }
 0x350   :  { %v383_v36 = vmul.f32 %v2229_v35, %v2225_v22  ;;  %v578_v37 = vpop.permute.xlu2 %577 }
 0x351   :  { %598 = vmatpush.msra.mxu2 %v578_v37 }
 0x352   :  { %2110 = vmatmul.msk.f32.vlgmr.msra.gmra.mxu3 %vm180_vm2, %v383_v36 }
 0x358   :  { %v692_v39 = vpop.permute.xlu2 %691 }
 0x359   :  { %2125 = vmatpush.xpose.msk.msrb.mxu2 %vm180_vm2, %v692_v39 }
 0x35a   :  { %2118 = vmatmul.msk.f32.vlgmr.msrb.gmra.mxu3 %vm180_vm2, %v526_v30 }
 0x360   :  { %v690_v6 = vpop.permute.xlu2 %689 }
 0x394   :  { %v408_v41 = vpop.f32.mrf.mxu2 }
 0x395   :  { %2111 = vmatmul.msk.f32.vlgmr.msrb.gmra.mxu0 %vm180_vm2, %v408_v41  ;;  %v2196_v41 = vld [vmem:[#allocation5 + $0xe3] ss:$0 sm:$0xff] }
 0x39a   :  { %v2512_v49 = vpop.f32.mrf.mxu1 }
 0x39c   :  { %v522_v42 = vpop.f32.mrf.mxu2 }
 0x39d   :  { %v553_v43 = vmul.f32 0.35355338, %v522_v42 }
 0x39f   :  { %v555_v44 = vsel %vm180_vm2, %v553_v43, -inf }
 0x3a0   :  { %556 = vmax.xlane.f32.xlu1 %v555_v44 }
 0x3a2   :  { %v2514_v52 = vpop.f32.mrf.mxu1 }
 0x3aa   :  { %v686_v56 = vpop.f32.mrf.mxu1 }
 0x3ab   :  { %v717_v57 = vmul.f32 0.35355338, %v686_v56 }
 0x3ad   :  { %v719_v58 = vsel %vm180_vm2, %v717_v57, -inf }
 0x3d5   :  { %v435_v45 = vpop.f32.mrf.mxu3 }
 0x3d6   :  { %2112 = vmatmul.msk.f32.gmra.mxu0 %vm180_vm2, %v435_v45 }
 0x3dd   :  { %v550_v46 = vpop.f32.mrf.mxu3 }
 0x3de   :  { %v554_v47 = vmul.f32 0.35355338, %v550_v46 }
 0x3e0   :  { %v558_v48 = vsel %vm180_vm2, %v554_v47, -inf }
 0x3e1   :  { %559 = vmax.xlane.f32.xlu1 %v558_v48 }
 0x412   :  { %v462_v35 = vpop.f32.mrf.mxu0 }
 0x413   :  { %v557_v50 = vpop.xlane.xlu1 %556  ;;  %v492_v39 = vadd.f32 %v2512_v49, %v462_v35  ;;  %v891_v49 = vld [vmem:[#allocation5 + $0x90] sm:$0xff] }
 0x414   :  { %v561_v51 = vsub.f32 %v553_v43, %v557_v50 }
 0x416   :  { %v563_v53 = vmul.f32 1.442695, %v561_v51  ;;  %v892_v51 = vld [vmem:[#allocation5 + $0x98] sm:$0xff] }
 0x418   :  { %2230 = vpow2.f32 %v563_v53  ;;  %v890_v53 = vld [vmem:[#allocation5 + $0x88] sm:$0xff] }
 0x41e   :  { %v2231_v54 = vpop.eup %2230 }
 0x41f   :  { %v567_v55 = vsel %vm180_vm2, %v2231_v54, 0.0 }
 0x420   :  { %568 = vadd.xlane.f32.xlu0 %v567_v55  ;;  %v889_v55 = vld [vmem:[#allocation5 + $0x80] sm:$0xff] }
 0x428   :  { %720 = vmax.xlane.f32.xlu0 %v719_v58 }
 0x43c   :  { %603 = vrot.lane.b32.xlu0 %v2451_v38, %s2385_s26 }
 0x453   :  { %v465_v36 = vpop.f32.mrf.mxu0 }
 0x454   :  { %v560_v59 = vpop.xlane.xlu1 %559 }
 0x455   :  { %v562_v60 = vsub.f32 %v554_v47, %v560_v59 }
 0x457   :  { %v565_v61 = vmul.f32 1.442695, %v562_v60 }
 0x459   :  { %2232 = vpow2.f32 %v565_v61 }
 0x45f   :  { %v2233_v62 = vpop.eup %2232 }
 0x460   :  { %v570_v63 = vsel %vm180_vm2, %v2233_v62, 0.0 }
 0x461   :  { %571 = vadd.xlane.f32.xlu2 %v570_v63 }
 0x479   :  { %767 = vrot.lane.b32.xlu2 %v2451_v38, %s2386_s27 }
 0x493   :  { %v569_v0 = vpop.xlane.xlu0 %568 }
 0x494   :  { %2234 = vrcp.f32 %v569_v0 }
 0x49a   :  { %v2235_v1 = vpop.eup %2234 }
 0x49b   :  { %v575_v2 = vmul.f32 %v2235_v1, %v2231_v54  ;;  %v721_v3 = vpop.xlane.xlu0 %720 }
 0x49c   :  { %v725_v4 = vsub.f32 %v717_v57, %v721_v3 }
 0x49d   :  { %2119 = vmatmul.msk.f32.vlgmr.msra.gmra.mxu2 %vm180_vm2, %v575_v2 }
 0x49e   :  { %v727_v5 = vmul.f32 1.442695, %v725_v4  ;;  %815 = vmatpush.msra.mxu2 %v793_v24 }
 0x4a0   :  { %2236 = vpow2.f32 %v727_v5  ;;  %v2197_v5 = vld [vmem:[#allocation5 + $0xe6] ss:$0 sm:$0xff] }
 0x4a5   :  { %2126 = vmatmul.msk.f32.vlgmr.msrb.gmra.mxu2 %vm180_vm2, %v690_v6 }
 0x4a6   :  { %v2237_v7 = vpop.eup %2236 }
 0x4a7   :  { %v731_v8 = vsel %vm180_vm2, %v2237_v7, 0.0 }
 0x4a8   :  { %732 = vadd.xlane.f32.xlu1 %v731_v8  ;;  %v2198_v8 = vld [vmem:[#allocation5 + $0xe7] ss:$0 sm:$0xff] }
 0x4ae   :  { %v604_v9 = vpop.permute.xlu0 %603 }
 0x4af   :  { %624 = vmatpush.msra.mxu3 %v604_v9 }
 0x4c1   :  { %741 = vrot.lane.b32.xlu1 %v2439_v31, %s2386_s27 }
 0x4d4   :  { %v572_v38 = vpop.xlane.xlu2 %571 }
 0x4d5   :  { %2238 = vrcp.f32 %v572_v38 }
 0x4db   :  { %v2239_v10 = vpop.eup %2238 }
 0x4dc   :  { %v576_v11 = vmul.f32 %v2239_v10, %v2233_v62  ;;  %v768_v12 = vpop.permute.xlu2 %767  ;;  %v900_v10 = vld [vmem:[#allocation5 + $0xd8] sm:$0xff] }
 0x4dd   :  { %788 = vmatpush.msrb.mxu1 %v768_v12  ;;  %951 = vmatpush.msrb.mxu0 %v900_v10  ;;  %v898_v12 = vld [vmem:[#allocation5 + $0xc8] sm:$0xff]  ;;  %v1035_v10 = vld [vmem:[#allocation5 + $0x130] sm:$0xff] }
 0x4de   :  { %2120 = vmatmul.msk.f32.vlgmr.msra.gmra.mxu3 %vm180_vm2, %v576_v11  ;;  %v899_v11 = vld [vmem:[#allocation5 + $0xd0] sm:$0xff] }
 0x4df   :  { %952 = vmatpush.msrb.mxu0 %v899_v11 }
 0x4e1   :  { %953 = vmatpush.msrb.mxu0 %v898_v12 }
 0x4e3   :  { %954 = vmatpush.msrb.mxu0 %v897_v13 }
 0x51b   :  { %v733_v15 = vpop.xlane.xlu1 %732 }
 0x51c   :  { %2240 = vrcp.f32 %v733_v15 }
 0x520   :  { %v600_v14 = vpop.f32.mrf.mxu2 }
 0x521   :  { %2121 = vmatmul.msk.f32.vlgmr.msra.gmra.mxu0 %vm180_vm2, %v600_v14  ;;  %v896_v14 = vld [vmem:[#allocation5 + $0xb8] sm:$0xff] }
 0x522   :  { %v2241_v31 = vpop.eup %2240  ;;  %955 = vmatpush.msrb.mxu0 %v896_v14 }
 0x523   :  { %v739_v19 = vmul.f32 %v2241_v31, %v2237_v7 }
 0x528   :  { %v714_v16 = vpop.f32.mrf.mxu2 }
 0x529   :  { %v718_v17 = vmul.f32 0.35355338, %v714_v16  ;;  %v495_v16 = vadd.f32 %v2514_v52, %v465_v36  ;;  %v2199_v52 = vld [vmem:[#allocation5 + $0xe4] ss:$0 sm:$0xff] }
 0x52b   :  { %v722_v18 = vsel %vm180_vm2, %v718_v17, -inf }
 0x52c   :  { %723 = vmax.xlane.f32.xlu0 %v722_v18 }
 0x533   :  { %v742_v21 = vpop.permute.xlu1 %741 }
 0x534   :  { %762 = vmatpush.msrb.mxu3 %v742_v21 }
 0x535   :  { %2127 = vmatmul.msk.f32.vlgmr.msrb.gmra.mxu3 %vm180_vm2, %v739_v19 }
 0x536   :  { %921 = vmatpush.msra.mxu3 %v892_v51 }
 0x538   :  { %922 = vmatpush.msra.mxu3 %v891_v49 }
 0x53a   :  { %923 = vmatpush.msra.mxu3 %v890_v53  ;;  %v2554_v53 = vld [vmem:[#allocation5 + $0xe5] ss:$0 sm:$0xff] }
 0x53c   :  { %924 = vmatpush.msra.mxu3 %v889_v55 }
 0x561   :  { %v626_v22 = vpop.f32.mrf.mxu3 }
 0x562   :  { %2122 = vmatmul.msk.f32.gmra.mxu0 %vm180_vm2, %v626_v22 }
 0x59e   :  { %v653_v37 = vpop.f32.mrf.mxu0 }
 0x59f   :  { %v724_v25 = vpop.xlane.xlu0 %723  ;;  %v659_v40 = vadd.f32 %v653_v37, %v492_v39 }
 0x5a0   :  { %v726_v26 = vsub.f32 %v718_v17, %v724_v25 }
 0x5a2   :  { %v729_v27 = vmul.f32 1.442695, %v726_v26  ;;  %v895_v26 = vld [vmem:[#allocation5 + $0xb0] sm:$0xff] }
 0x5a3   :  { %956 = vmatpush.msrb.mxu0 %v895_v26 }
 0x5a4   :  { %2242 = vpow2.f32 %v729_v27  ;;  %v894_v27 = vld [vmem:[#allocation5 + $0xa8] sm:$0xff] }
 0x5a5   :  { %957 = vmatpush.msrb.mxu0 %v894_v27 }
 0x5aa   :  { %v2243_v28 = vpop.eup %2242 }
 0x5ab   :  { %v734_v29 = vsel %vm180_vm2, %v2243_v28, 0.0 }
 0x5ac   :  { %735 = vadd.xlane.f32.xlu1 %v734_v29 }
 0x5b8   :  { %v764_v30 = vpop.f32.mrf.mxu3 }
 0x5b9   :  { %2129 = vmatmul.msk.f32.vlgmr.msra.gmra.mxu2 %vm180_vm2, %v764_v30 }
 0x5df   :  { %v656_v15 = vpop.f32.mrf.mxu0 }
 0x5e0   :  { %v660_v17 = vadd.f32 %v656_v15, %v495_v16 }
 0x61f   :  { %v736_v32 = vpop.xlane.xlu1 %735 }
 0x620   :  { %2244 = vrcp.f32 %v736_v32 }
 0x626   :  { %v2245_v33 = vpop.eup %2244 }
 0x627   :  { %v740_v34 = vmul.f32 %v2245_v33, %v2243_v28  ;;  %v893_v28 = vld [vmem:[#allocation5 + $0xa0] sm:$0xff] }
 0x628   :  { %958 = vmatpush.msrb.mxu0 %v893_v28  ;;  %v2202_v28 = vld [vmem:[#allocation5 + $0xe9] ss:$0 sm:$0xff] }
 0x629   :  { %2128 = vmatmul.msk.f32.vlgmr.msrb.gmra.mxu1 %vm180_vm2, %v740_v34 }
 0x63c   :  { %v817_v42 = vpop.f32.mrf.mxu2 }
 0x63d   :  { %v823_v43 = vadd.f32 %v817_v42, %v659_v40 }
 0x63f   :  { %v827_v44 = vadd.f32 %v2196_v41, %v823_v43 }
 0x641   :  { %v829_v45 = vadd.f32 %v827_v44, %v2421_v20 }
 0x643   :  { %v833_v46 = vsel %vm102_vm1, %v829_v45, 0.0  ;;  %v839_v47 = vmul.f32 %v829_v45, %v829_v45 }
 0x644   :  { %834 = vadd.xlane.f32.xlu2 %v833_v46 }
 0x645   :  { %v841_v48 = vsel %vm102_vm1, %v839_v47, 0.0 }
 0x646   :  { %842 = vadd.xlane.f32.xlu0 %v841_v48 }
 0x6a6   :  { %v790_v50 = vpop.f32.mrf.mxu1 }
 0x6a7   :  { %2130 = vmatmul.msk.f32.gmra.mxu2 %vm180_vm2, %v790_v50 }
 0x6b7   :  { %v835_v54 = vpop.xlane.xlu2 %834 }
 0x6b8   :  { %v847_v56 = vmul.f32 0.03125, %v835_v54 }
 0x6b9   :  { %v843_v20 = vpop.xlane.xlu0 %842 }
 0x6ba   :  { %v851_v57 = vmul.f32 %v847_v56, %v847_v56  ;;  %v849_v58 = vmul.f32 0.03125, %v843_v20  ;;  %v857_v4 = vsub.f32 %v829_v45, %v847_v56 }
 0x6bc   :  { %v853_v59 = vsub.f32 %v849_v58, %v851_v57 }
 0x6be   :  { %v855_v60 = vmax.f32 %v853_v59, 0.0 }
 0x6c0   :  { %v859_v61 = vadd.f32 1e-05, %v855_v60 }
 0x6c2   :  { %2246 = vrsqrt.f32 %v859_v61  ;;  %vm867_vm4 = vweird.f32 %v859_v61 }
 0x6c8   :  { %v2247_v62 = vpop.eup %2246 }
 0x6c9   :  { %v862_v63 = vmul.f32 %v2247_v62, %v859_v61  ;;  %vm868_vm3 = vweird.f32 %v2247_v62 }
 0x6ca   :  { %vm869_vm5 = vmor %vm867_vm4, %vm868_vm3 }
 0x6cb   :  { %v863_v0 = vmul.f32 %v2247_v62, %v862_v63  ;;  %v1034_v63 = vld [vmem:[#allocation5 + $0x128] sm:$0xff] }
 0x6cc   :  { %1085 = vmatpush.msrb.mxu2 %v1034_v63 }
 0x6cd   :  { %v864_v1 = vmul.f32 0.5, %v863_v0  ;;  %v1038_v0 = vld [vmem:[#allocation5 + $0x148] sm:$0xff] }
 0x6ce   :  { %1109 = vmatpush.msrb.mxu3 %v1038_v0 }
 0x6cf   :  { %v865_v2 = vsub.f32 1.5, %v864_v1  ;;  %v1029_v1 = vld [vmem:[#allocation5 + $0x100] sm:$0xff] }
 0x6d1   :  { %v866_v3 = vmul.f32 %v2247_v62, %v865_v2  ;;  %v1033_v2 = vld [vmem:[#allocation5 + $0x120] sm:$0xff] }
 0x6d2   :  { %1086 = vmatpush.msrb.mxu2 %v1033_v2 }
 0x6d3   :  { %v870_v6 = vsel %vm869_vm5, %v2247_v62, %v866_v3  ;;  %v1030_v62 = vld [vmem:[#allocation5 + $0x108] sm:$0xff]  ;;  %v1037_v3 = vld [vmem:[#allocation5 + $0x140] sm:$0xff] }
 0x6d4   :  { %v881_v7 = vmul.f32 %v870_v6, %v857_v4  ;;  %1061 = vmatpush.msra.mxu1 %v1030_v62  ;;  %v1028_v4 = vld [vmem:[#allocation5 + $0xf8] sm:$0xff]  ;;  %1110 = vmatpush.msrb.mxu3 %v1037_v3 }
 0x6d5   :  { %v1036_v6 = vld [vmem:[#allocation5 + $0x138] sm:$0xff] }
 0x6d6   :  { %v884_v9 = vmul.f32 %v2197_v5, %v881_v7  ;;  %1062 = vmatpush.msra.mxu1 %v1029_v1  ;;  %1111 = vmatpush.msrb.mxu3 %v1036_v6 }
 0x6d8   :  { %v2541_v38 = vadd.f32 %v2198_v8, %v884_v9  ;;  %v1031_v9 = vld [vmem:[#allocation5 + $0x110] sm:$0xff]  ;;  %1063 = vmatpush.msra.mxu1 %v1028_v4  ;;  %1112 = vmatpush.msrb.mxu3 %v1035_v10 }
 0x6da   :  { %2131 = vmatmul.msk.f32.vlgmr.msra.gmra.mxu3 %vm102_vm1, %v2541_v38 }
 0x72a   :  { %v820_v18 = vpop.f32.mrf.mxu2 }
 0x72b   :  { %v824_v31 = vadd.f32 %v820_v18, %v660_v17 }
 0x72d   :  { %v828_v19 = vadd.f32 %v2196_v41, %v824_v31 }
 0x72f   :  { %v830_v21 = vadd.f32 %v828_v19, %v2429_v23 }
 0x731   :  { %v836_v22 = vsel %vm102_vm1, %v830_v21, 0.0  ;;  %v840_v24 = vmul.f32 %v830_v21, %v830_v21 }
 0x732   :  { %837 = vadd.xlane.f32.xlu0 %v836_v22 }
 0x733   :  { %v844_v25 = vsel %vm102_vm1, %v840_v24, 0.0 }
 0x734   :  { %845 = vadd.xlane.f32.xlu1 %v844_v25  ;;  %v2201_v25 = vld [vmem:[#allocation5 + $0xe8] ss:$0 sm:$0xff] }
 0x75d   :  { %v926_v29 = vpop.f32.mrf.mxu3 }
 0x75e   :  { %v927_v30 = vadd.f32 %v2199_v52, %v926_v29 }
 0x760   :  { %v932_v32 = vmax.f32 %v927_v30, 0.0 }
 0x762   :  { %2133 = vmatmul.msk.f32.vlgmr.msrb.gmra.mxu0 %vm936_vm6, %v932_v32 }
 0x7a5   :  { %v838_v23 = vpop.xlane.xlu0 %837 }
 0x7a6   :  { %v848_v33 = vmul.f32 0.03125, %v838_v23 }
 0x7a7   :  { %v846_v34 = vpop.xlane.xlu1 %845 }
 0x7a8   :  { %v852_v35 = vmul.f32 %v848_v33, %v848_v33  ;;  %v850_v36 = vmul.f32 0.03125, %v846_v34  ;;  %v858_v47 = vsub.f32 %v830_v21, %v848_v33 }
 0x7aa   :  { %v854_v37 = vsub.f32 %v850_v36, %v852_v35  ;;  %v2203_v36 = vld [vmem:[#allocation5 + $0x1d0] ss:$0 sm:$0xff] }
 0x7ac   :  { %v856_v39 = vmax.f32 %v854_v37, 0.0 }
 0x7ae   :  { %v860_v40 = vadd.f32 1e-05, %v856_v39 }
 0x7b0   :  { %2248 = vrsqrt.f32 %v860_v40  ;;  %vm877_vm8 = vweird.f32 %v860_v40 }
 0x7b6   :  { %v2249_v41 = vpop.eup %2248 }
 0x7b7   :  { %v872_v42 = vmul.f32 %v2249_v41, %v860_v40  ;;  %vm878_vm7 = vweird.f32 %v2249_v41  ;;  %v2204_v40 = vld [vmem:[#allocation5 + $0x1d1] ss:$0 sm:$0xff] }
 0x7b8   :  { %vm879_vm9 = vmor %vm877_vm8, %vm878_vm7 }
 0x7b9   :  { %v873_v43 = vmul.f32 %v2249_v41, %v872_v42 }
 0x7bb   :  { %v874_v44 = vmul.f32 0.5, %v873_v43 }
 0x7bd   :  { %v875_v45 = vsub.f32 1.5, %v874_v44 }
 0x7bf   :  { %v876_v46 = vmul.f32 %v2249_v41, %v875_v45 }
 0x7c1   :  { %v880_v48 = vsel %vm879_vm9, %v2249_v41, %v876_v46  ;;  %v2205_v41 = vld [vmem:[#allocation5 + $0x1d2] ss:$0 sm:$0xff] }
 0x7c2   :  { %v882_v50 = vmul.f32 %v880_v48, %v858_v47 }
 0x7c4   :  { %v885_v51 = vmul.f32 %v2197_v5, %v882_v50  ;;  %v1032_v5 = vld [vmem:[#allocation5 + $0x118] sm:$0xff] }
 0x7c5   :  { %1087 = vmatpush.msrb.mxu2 %v1032_v5 }
 0x7c6   :  { %v2550_v49 = vadd.f32 %v2198_v8, %v885_v51  ;;  %v1027_v8 = vld [vmem:[#allocation5 + $0xf0] sm:$0xff] }
 0x7c7   :  { %1064 = vmatpush.msra.mxu1 %v1027_v8  ;;  %1088 = vmatpush.msrb.mxu2 %v1031_v9 }
 0x7c8   :  { %2132 = vmatmul.msk.f32.gmra.mxu3 %vm102_vm1, %v2550_v49 }
 0x7df   :  { %v960_v54 = vpop.f32.mrf.mxu0 }
 0x7e0   :  { %v961_v55 = vadd.f32 %v2554_v53, %v960_v54 }
 0x7e2   :  { %v966_v56 = vadd.f32 %v961_v55, %v2541_v38 }
 0x7e4   :  { %v970_v20 = vsel %vm102_vm1, %v966_v56, 0.0  ;;  %v976_v57 = vmul.f32 %v966_v56, %v966_v56 }
 0x7e5   :  { %971 = vadd.xlane.f32.xlu0 %v970_v20 }
 0x7e6   :  { %v978_v58 = vsel %vm102_vm1, %v976_v57, 0.0 }
 0x7e7   :  { %979 = vadd.xlane.f32.xlu1 %v978_v58 }
 0x84b   :  { %v929_v59 = vpop.f32.mrf.mxu3 }
 0x84c   :  { %v930_v60 = vadd.f32 %v2199_v52, %v929_v59 }
 0x84e   :  { %v933_v61 = vmax.f32 %v930_v60, 0.0 }
 0x850   :  { %2134 = vmatmul.msk.f32.gmra.mxu0 %vm936_vm6, %v933_v61 }
 0x858   :  { %v972_v7 = vpop.xlane.xlu0 %971 }
 0x859   :  { %v984_v38 = vmul.f32 0.03125, %v972_v7 }
 0x85a   :  { %v980_v11 = vpop.xlane.xlu1 %979 }
 0x85b   :  { %v988_v12 = vmul.f32 %v984_v38, %v984_v38  ;;  %v986_v13 = vmul.f32 0.03125, %v980_v11  ;;  %v994_v24 = vsub.f32 %v966_v56, %v984_v38 }
 0x85d   :  { %v990_v14 = vsub.f32 %v986_v13, %v988_v12 }
 0x85f   :  { %v992_v15 = vmax.f32 %v990_v14, 0.0 }
 0x861   :  { %v996_v16 = vadd.f32 1e-05, %v992_v15 }
 0x863   :  { %2250 = vrsqrt.f32 %v996_v16  ;;  %vm1004_vm11 = vweird.f32 %v996_v16 }
 0x869   :  { %v2251_v17 = vpop.eup %2250 }
 0x86a   :  { %v999_v18 = vmul.f32 %v2251_v17, %v996_v16  ;;  %vm1005_vm10 = vweird.f32 %v2251_v17 }
 0x86b   :  { %vm1006_vm12 = vmor %vm1004_vm11, %vm1005_vm10 }
 0x86c   :  { %v1000_v31 = vmul.f32 %v2251_v17, %v999_v18 }
 0x86e   :  { %v1001_v19 = vmul.f32 0.5, %v1000_v31 }
 0x870   :  { %v1002_v21 = vsub.f32 1.5, %v1001_v19 }
 0x872   :  { %v1003_v22 = vmul.f32 %v2251_v17, %v1002_v21 }
 0x874   :  { %v1007_v26 = vsel %vm1006_vm12, %v2251_v17, %v1003_v22 }
 0x875   :  { %v1018_v27 = vmul.f32 %v1007_v26, %v994_v24 }
 0x877   :  { %v1021_v52 = vmul.f32 %v2201_v25, %v1018_v27 }
 0x879   :  { %v2561_v29 = vadd.f32 %v2202_v28, %v1021_v52 }
 0x87b   :  { %2135 = vmatmul.msk.f32.vlgmr.msra.gmra.mxu1 %vm102_vm1, %v2561_v29  ;;  %2137 = vmatmul.msk.f32.vlgmr.msrb.gmra.mxu2 %vm102_vm1, %v2561_v29 }
 0x87c   :  { %2139 = vmatmul.msk.f32.vlgmr.msrb.gmra.mxu3 %vm102_vm1, %v2561_v29 }
 0x8cd   :  { %v963_v30 = vpop.f32.mrf.mxu0 }
 0x8ce   :  { %v964_v32 = vadd.f32 %v2554_v53, %v963_v30 }
 0x8d0   :  { %v967_v23 = vadd.f32 %v964_v32, %v2550_v49 }
 0x8d2   :  { %v973_v33 = vsel %vm102_vm1, %v967_v23, 0.0  ;;  %v977_v34 = vmul.f32 %v967_v23, %v967_v23 }
 0x8d3   :  { %974 = vadd.xlane.f32.xlu0 %v973_v33 }
 0x8d4   :  { %v981_v35 = vsel %vm102_vm1, %v977_v34, 0.0 }
 0x8d5   :  { %982 = vadd.xlane.f32.xlu1 %v981_v35  ;;  %v1242_v35 = vld [vmem:[#allocation5 + $0x150] sm:$0xff] }
 0x8f8   :  { %v1066_v37 = vpop.f32.mrf.mxu1 }
 0x8f9   :  { %v2573_v39 = vadd.f32 %v2203_v36, %v1066_v37 }
 0x8fb   :  { %1243 = vrot.lane.b32.xlu1 %v2573_v39, %s2384_s0 }
 0x8fe   :  { %v1090_v42 = vpop.f32.mrf.mxu2 }
 0x8ff   :  { %v2577_v43 = vadd.f32 %v2204_v40, %v1090_v42  ;;  %v1114_v44 = vpop.f32.mrf.mxu3 }
 0x900   :  { %v2579_v45 = vadd.f32 %v2205_v41, %v1114_v44 }
 0x901   :  { %1245 = vrot.lane.b32.xlu0 %v2577_v43, %s2384_s0  ;;  %2141 = vmatpush.xpose.msk.msra.mxu0 %vm180_vm2, %v2577_v43 }
 0x904   :  { %2142 = vmatmul.msk.f32.vlgmr.msra.gmra.mxu0 %vm180_vm2, %v2573_v39 }
 0x905   :  { %1214 = vmatpush.msrb.mxu0 %v2579_v45 }
 0x946   :  { %v975_v46 = vpop.xlane.xlu0 %974 }
 0x947   :  { %v985_v47 = vmul.f32 0.03125, %v975_v46 }
 0x948   :  { %v983_v48 = vpop.xlane.xlu1 %982 }
 0x949   :  { %v989_v50 = vmul.f32 %v985_v47, %v985_v47  ;;  %v987_v51 = vmul.f32 0.03125, %v983_v48  ;;  %v995_v60 = vsub.f32 %v967_v23, %v985_v47 }
 0x94b   :  { %v991_v49 = vsub.f32 %v987_v51, %v989_v50 }
 0x94d   :  { %v993_v53 = vmax.f32 %v991_v49, 0.0 }
 0x94f   :  { %v997_v54 = vadd.f32 1e-05, %v993_v53 }
 0x951   :  { %2252 = vrsqrt.f32 %v997_v54  ;;  %vm1014_vm14 = vweird.f32 %v997_v54 }
 0x957   :  { %v2253_v55 = vpop.eup %2252 }
 0x958   :  { %v1009_v56 = vmul.f32 %v2253_v55, %v997_v54  ;;  %vm1015_vm13 = vweird.f32 %v2253_v55  ;;  %v1377_v54 = vld [vmem:[#allocation5 + $0x158] sm:$0xff] }
 0x959   :  { %vm1016_vm15 = vmor %vm1014_vm14, %vm1015_vm13  ;;  %vm1991_vm14 = vcmask 1041409  }
 0x95a   :  { %v1010_v20 = vmul.f32 %v2253_v55, %v1009_v56 }
 0x95c   :  { %v1011_v57 = vmul.f32 0.5, %v1010_v20 }
 0x95e   :  { %v1012_v58 = vsub.f32 1.5, %v1011_v57 }
 0x960   :  { %v1013_v59 = vmul.f32 %v2253_v55, %v1012_v58 }
 0x962   :  { %v1017_v61 = vsel %vm1016_vm15, %v2253_v55, %v1013_v59  ;;  %vm1994_vm15 = vcmask 254976  }
 0x963   :  { %v1019_v62 = vmul.f32 %v1017_v61, %v995_v60 }
 0x965   :  { %v1022_v63 = vmul.f32 %v2201_v25, %v1019_v62 }
 0x967   :  { %v2588_v0 = vadd.f32 %v2202_v28, %v1022_v63 }
 0x969   :  { %2136 = vmatmul.msk.f32.gmra.mxu1 %vm102_vm1, %v2588_v0  ;;  %2138 = vmatmul.msk.f32.gmra.mxu2 %vm102_vm1, %v2588_v0 }
 0x96a   :  { %2140 = vmatmul.msk.f32.gmra.mxu3 %vm102_vm1, %v2588_v0 }
 0x96d   :  { %v1244_v2 = vpop.permute.xlu1 %1243 }
 0x973   :  { %v1246_v1 = vpop.permute.xlu0 %1245 }
 0x974   :  { %2147 = vmatpush.xpose.msk.msra.mxu2 %vm180_vm2, %v1246_v1 }
 0x977   :  { %2148 = vmatmul.msk.f32.vlgmr.msra.gmra.mxu2 %vm180_vm2, %v1244_v2 }
 0x978   :  { %1399 = vmatpush.msrb.mxu2 %v1377_v54 }
 0x981   :  { %v1143_v3 = vpop.f32.mrf.mxu0 }
 0x982   :  { %v1172_v4 = vmul.f32 0.35355338, %v1143_v3 }
 0x984   :  { %v1174_v5 = vsel %vm180_vm2, %v1172_v4, -inf }
 0x985   :  { %1175 = vmax.xlane.f32.xlu2 %v1174_v5 }
 0x9e6   :  { %v1069_v7 = vpop.f32.mrf.mxu1 }
 0x9e7   :  { %v2605_v10 = vadd.f32 %v2203_v36, %v1069_v7 }
 0x9ec   :  { %v1093_v6 = vpop.f32.mrf.mxu2 }
 0x9ed   :  { %v2599_v8 = vadd.f32 %v2204_v40, %v1093_v6  ;;  %v1117_v9 = vpop.f32.mrf.mxu3 }
 0x9ee   :  { %v2601_v38 = vadd.f32 %v2205_v41, %v1117_v9 }
 0x9ef   :  { %2143 = vmatpush.xpose.msk.msrb.mxu1 %vm180_vm2, %v2599_v8 }
 0x9f2   :  { %2144 = vmatmul.msk.f32.vlgmr.msrb.gmra.mxu1 %vm180_vm2, %v2605_v10 }
 0x9f3   :  { %1237 = vmatpush.msra.mxu1 %v2601_v38 }
 0x9f8   :  { %v1176_v11 = vpop.xlane.xlu2 %1175 }
 0x9f9   :  { %v1180_v12 = vsub.f32 %v1172_v4, %v1176_v11 }
 0x9fa   :  { %v1268_v13 = vpop.f32.mrf.mxu2 }
 0x9fb   :  { %v1182_v14 = vmul.f32 1.442695, %v1180_v12  ;;  %v1299_v15 = vmul.f32 0.35355338, %v1268_v13 }
 0x9fd   :  { %2254 = vpow2.f32 %v1182_v14  ;;  %v1301_v16 = vsel %vm180_vm2, %v1299_v15, -inf }
 0x9fe   :  { %1302 = vmax.xlane.f32.xlu2 %v1301_v16 }
 0xa03   :  { %v2255_v17 = vpop.eup %2254 }
 0xa04   :  { %v1186_v18 = vsel %vm180_vm2, %v2255_v17, 0.0 }
 0xa05   :  { %1187 = vadd.xlane.f32.xlu0 %v1186_v18 }
 0xa16   :  { %1273 = vrot.lane.b32.xlu2 %v2599_v8, %s2384_s0 }
 0xa19   :  { %1436 = vrot.lane.b32.xlu0 %v2573_v39, %s2385_s26 }
 0xa1e   :  { %1271 = vrot.lane.b32.xlu2 %v2605_v10, %s2384_s0 }
 0xa26   :  { %1324 = vrot.lane.b32.xlu2 %v2579_v45, %s2384_s0 }
 0xa2e   :  { %1438 = vrot.lane.b32.xlu2 %v2577_v43, %s2385_s26 }
 0xa6f   :  { %v1169_v27 = vpop.f32.mrf.mxu1 }
 0xa70   :  { %v1173_v30 = vmul.f32 0.35355338, %v1169_v27 }
 0xa71   :  { %v1303_v31 = vpop.xlane.xlu2 %1302 }
 0xa72   :  { %v1307_v19 = vsub.f32 %v1299_v15, %v1303_v31  ;;  %v1177_v23 = vsel %vm180_vm2, %v1173_v30, -inf }
 0xa74   :  { %v1309_v21 = vmul.f32 1.442695, %v1307_v19 }
 0xa76   :  { %2256 = vpow2.f32 %v1309_v21 }
 0xa78   :  { %v1188_v22 = vpop.xlane.xlu0 %1187 }
 0xa79   :  { %2258 = vrcp.f32 %v1188_v22  ;;  %v1274_v24 = vpop.permute.xlu2 %1273 }
 0xa7a   :  { %2149 = vmatpush.xpose.msk.msra.mxu3 %vm180_vm2, %v1274_v24 }
 0xa7c   :  { %v2257_v25 = vpop.eup %2256 }
 0xa7d   :  { %v1313_v26 = vsel %vm180_vm2, %v2257_v25, 0.0 }
 0xa7e   :  { %1314 = vadd.xlane.f32.xlu1 %v1313_v26  ;;  %1428 = vmatpush.msrb.mxu3 %v1242_v35 }
 0xa7f   :  { %v2259_v28 = vpop.eup %2258 }
 0xa80   :  { %v1194_v52 = vmul.f32 %v2259_v28, %v2255_v17 }
 0xa81   :  { %v1272_v32 = vpop.permute.xlu2 %1271 }
 0xa82   :  { %2145 = vmatmul.msk.f32.vlgmr.msrb.gmra.mxu0 %vm180_vm2, %v1194_v52  ;;  %2150 = vmatmul.msk.f32.vlgmr.msra.gmra.mxu3 %vm180_vm2, %v1272_v32  ;;  %v1568_v32 = vld [vmem:[#allocation5 + $0x160] sm:$0xff] }
 0xa83   :  { %1590 = vmatpush.msra.mxu2 %v1568_v32  ;;  %v1831_v32 = vld [vmem:[#allocation5 + $0x188] sm:$0xff] }
 0xa86   :  { %1178 = vmax.xlane.f32.xlu1 %v1177_v23 }
 0xa89   :  { %v1325_v33 = vpop.permute.xlu2 %1324 }
 0xa8a   :  { %1345 = vmatpush.msra.mxu0 %v1325_v33 }
 0xa8b   :  { %v1437_v47 = vpop.permute.xlu0 %1436 }
 0xa91   :  { %v1439_v34 = vpop.permute.xlu2 %1438 }
 0xa92   :  { %2157 = vmatpush.xpose.msk.msrb.mxu0 %vm180_vm2, %v1439_v34 }
 0xaf1   :  { %v1315_v36 = vpop.xlane.xlu1 %1314 }
 0xaf2   :  { %2260 = vrcp.f32 %v1315_v36 }
 0xaf8   :  { %v2261_v37 = vpop.eup %2260 }
 0xaf9   :  { %v1321_v40 = vmul.f32 %v2261_v37, %v2257_v25  ;;  %v1179_v41 = vpop.xlane.xlu1 %1178 }
 0xafa   :  { %v1181_v42 = vsub.f32 %v1173_v30, %v1179_v41 }
 0xafb   :  { %2151 = vmatmul.msk.f32.vlgmr.msra.gmra.mxu0 %vm180_vm2, %v1321_v40 }
 0xafc   :  { %v1184_v44 = vmul.f32 1.442695, %v1181_v42 }
 0xafe   :  { %2262 = vpow2.f32 %v1184_v44 }
 0xaff   :  { %v1216_v46 = vpop.f32.mrf.mxu0 }
 0xb00   :  { %2155 = vmatmul.msk.f32.vlgmr.msrb.gmra.mxu3 %vm180_vm2, %v1216_v46 }
 0xb03   :  { %2158 = vmatmul.msk.f32.vlgmr.msrb.gmra.mxu0 %vm180_vm2, %v1437_v47 }
 0xb04   :  { %v2263_v48 = vpop.eup %2262 }
 0xb05   :  { %v1296_v50 = vpop.f32.mrf.mxu3  ;;  %v1189_v51 = vsel %vm180_vm2, %v2263_v48, 0.0 }
 0xb06   :  { %v1300_v49 = vmul.f32 0.35355338, %v1296_v50  ;;  %1190 = vadd.xlane.f32.xlu2 %v1189_v51 }
 0xb08   :  { %v1304_v53 = vsel %vm180_vm2, %v1300_v49, -inf }
 0xb09   :  { %1305 = vmax.xlane.f32.xlu1 %v1304_v53 }
 0xb1e   :  { %1602 = vrot.lane.b32.xlu2 %v2577_v43, %s2386_s27 }
 0xb78   :  { %v1347_v55 = vpop.f32.mrf.mxu0 }
 0xb79   :  { %v1191_v56 = vpop.xlane.xlu2 %1190  ;;  %2153 = vmatmul.msk.f32.vlgmr.msrb.gmra.mxu2 %vm180_vm2, %v1347_v55 }
 0xb7a   :  { %2264 = vrcp.f32 %v1191_v56 }
 0xb7c   :  { %v1306_v20 = vpop.xlane.xlu1 %1305 }
 0xb7d   :  { %v1308_v57 = vsub.f32 %v1300_v49, %v1306_v20  ;;  %v2187_v49 = vpack.i.bf16 %v2601_v38, %v2579_v45 }
 0xb7f   :  { %v1311_v58 = vmul.f32 1.442695, %v1308_v57 }
 0xb80   :  { %v2265_v59 = vpop.eup %2264  ;;  %v1461_v60 = vpop.f32.mrf.mxu0 }
 0xb81   :  { %v1195_v61 = vmul.f32 %v2265_v59, %v2263_v48  ;;  %2266 = vpow2.f32 %v1311_v58  ;;  %v1492_v62 = vmul.f32 0.35355338, %v1461_v60  ;;  %v1603_v63 = vpop.permute.xlu2 %1602 }
 0xb82   :  { %2165 = vmatpush.xpose.msk.msra.mxu3 %vm180_vm2, %v1603_v63 }
 0xb83   :  { %2146 = vmatmul.msk.f32.vlgmr.msra.gmra.mxu1 %vm180_vm2, %v1195_v61  ;;  %v1494_v43 = vsel %vm180_vm2, %v1492_v62, -inf  ;;  %v2664_v25 = vpop.f32.mrf.mxu3 }
 0xb84   :  { %1495 = vmax.xlane.f32.xlu0 %v1494_v43 }
 0xb87   :  { %v2267_v1 = vpop.eup %2266 }
 0xb88   :  { %v1316_v2 = vsel %vm180_vm2, %v2267_v1, 0.0 }
 0xb89   :  { %1317 = vadd.xlane.f32.xlu1 %v1316_v2 }
 0xb98   :  { %1464 = vrot.lane.b32.xlu0 %v2605_v10, %s2385_s26 }
 0xba2   :  { %1351 = vrot.lane.b32.xlu1 %v2601_v38, %s2384_s0 }
 0xbaa   :  { %1466 = vrot.lane.b32.xlu1 %v2599_v8, %s2385_s26 }
 0xbb2   :  { %1516 = vrot.lane.b32.xlu1 %v2579_v45, %s2385_s26 }
 0xbba   :  { %1600 = vrot.lane.b32.xlu1 %v2573_v39, %s2386_s27 }
 0xbc2   :  { %1630 = vrot.lane.b32.xlu1 %v2599_v8, %s2386_s27 }
 0xbf7   :  { %v1496_v3 = vpop.xlane.xlu0 %1495 }
 0xbf8   :  { %v1500_v4 = vsub.f32 %v1492_v62, %v1496_v3  ;;  %v1732_v3 = vld [vmem:[#allocation5 + $0x168] sm:$0xff] }
 0xbfa   :  { %v1502_v5 = vmul.f32 1.442695, %v1500_v4 }
 0xbfc   :  { %2268 = vpow2.f32 %v1502_v5  ;;  %v1318_v11 = vpop.xlane.xlu1 %1317 }
 0xbfd   :  { %2270 = vrcp.f32 %v1318_v11 }
 0xc00   :  { %v1239_v6 = vpop.f32.mrf.mxu1 }
 0xc01   :  { %2156 = vmatmul.msk.f32.gmra.mxu3 %vm180_vm2, %v1239_v6 }
 0xc02   :  { %v2269_v7 = vpop.eup %2268 }
 0xc03   :  { %v1506_v9 = vsel %vm180_vm2, %v2269_v7, 0.0  ;;  %v2271_v12 = vpop.eup %2270 }
 0xc04   :  { %1507 = vadd.xlane.f32.xlu2 %v1506_v9  ;;  %v1322_v13 = vmul.f32 %v2271_v12, %v2267_v1 }
 0xc0a   :  { %v1465_v8 = vpop.permute.xlu0 %1464 }
 0xc14   :  { %v1352_v14 = vpop.permute.xlu1 %1351 }
 0xc15   :  { %1372 = vmatpush.msrb.mxu1 %v1352_v14  ;;  %v2206_v14 = vld [vmem:[#allocation5 + $0x1d3] ss:$0 sm:$0xff] }
 0xc16   :  { %2152 = vmatmul.msk.f32.vlgmr.msrb.gmra.mxu1 %vm180_vm2, %v1322_v13 }
 0xc1c   :  { %v1467_v39 = vpop.permute.xlu1 %1466  ;;  %1628 = vrot.lane.b32.xlu2 %v2605_v10, %s2386_s27 }
 0xc1d   :  { %2159 = vmatpush.xpose.msk.msra.mxu1 %vm180_vm2, %v1467_v39 }
 0xc20   :  { %2160 = vmatmul.msk.f32.vlgmr.msra.gmra.mxu1 %vm180_vm2, %v1465_v8 }
 0xc24   :  { %v1517_v15 = vpop.permute.xlu1 %1516 }
 0xc25   :  { %1537 = vmatpush.msra.mxu0 %v1517_v15 }
 0xc2c   :  { %v1601_v16 = vpop.permute.xlu1 %1600 }
 0xc2d   :  { %2166 = vmatmul.msk.f32.vlgmr.msra.gmra.mxu3 %vm180_vm2, %v1601_v16 }
 0xc34   :  { %v1631_v17 = vpop.permute.xlu1 %1630 }
 0xc35   :  { %2167 = vmatpush.xpose.msk.msrb.mxu0 %vm180_vm2, %v1631_v17 }
 0xc77   :  { %v1508_v18 = vpop.xlane.xlu2 %1507 }
 0xc78   :  { %2272 = vrcp.f32 %v1508_v18 }
 0xc7e   :  { %v2273_v31 = vpop.eup %2272 }
 0xc7f   :  { %v1514_v19 = vmul.f32 %v2273_v31, %v2269_v7  ;;  %v1629_v10 = vpop.permute.xlu2 %1628  ;;  %v1401_v7 = vpop.f32.mrf.mxu2 }
 0xc80   :  { %v1431_v12 = vadd.f32 %v2664_v25, %v1401_v7 }
 0xc81   :  { %2161 = vmatmul.msk.f32.vlgmr.msra.gmra.mxu0 %vm180_vm2, %v1514_v19 }
 0xc82   :  { %1754 = vmatpush.msra.mxu0 %v1732_v3  ;;  %v1835_v3 = vld [vmem:[#allocation5 + $0x1a8] sm:$0xff] }
 0xc84   :  { %v2667_v27 = vpop.f32.mrf.mxu3 }
 0xc89   :  { %2168 = vmatmul.msk.f32.vlgmr.msrb.gmra.mxu0 %vm180_vm2, %v1629_v10 }
 0xc93   :  { %v1374_v21 = vpop.f32.mrf.mxu1 }
 0xc94   :  { %2154 = vmatmul.msk.f32.gmra.mxu2 %vm180_vm2, %v1374_v21 }
 0xc9d   :  { %v1489_v22 = vpop.f32.mrf.mxu1 }
 0xc9e   :  { %v1493_v24 = vmul.f32 0.35355338, %v1489_v22 }
 0xca0   :  { %v1497_v26 = vsel %vm180_vm2, %v1493_v24, -inf }
 0xca1   :  { %1498 = vmax.xlane.f32.xlu0 %v1497_v26 }
 0xcb0   :  { %v1625_v28 = vpop.f32.mrf.mxu3 }
 0xcb1   :  { %v1656_v52 = vmul.f32 0.35355338, %v1625_v28 }
 0xcb3   :  { %v1658_v30 = vsel %vm180_vm2, %v1656_v52, -inf }
 0xcb4   :  { %1659 = vmax.xlane.f32.xlu1 %v1658_v30 }
 0xccd   :  { %1542 = vrot.lane.b32.xlu1 %v2601_v38, %s2385_s26 }
 0xcfe   :  { %v1539_v23 = vpop.f32.mrf.mxu0 }
 0xcff   :  { %2163 = vmatmul.msk.f32.vlgmr.msra.gmra.mxu2 %vm180_vm2, %v1539_v23  ;;  %v1829_v23 = vld [vmem:[#allocation5 + $0x178] sm:$0xff] }
 0xd06   :  { %v1653_v33 = vpop.f32.mrf.mxu0 }
 0xd07   :  { %v1657_v34 = vmul.f32 0.35355338, %v1653_v33 }
 0xd09   :  { %v1661_v35 = vsel %vm180_vm2, %v1657_v34, -inf }
 0xd0a   :  { %1662 = vmax.xlane.f32.xlu2 %v1661_v35 }
 0xd14   :  { %v1499_v36 = vpop.xlane.xlu0 %1498 }
 0xd15   :  { %v1501_v37 = vsub.f32 %v1493_v24, %v1499_v36 }
 0xd17   :  { %v1504_v40 = vmul.f32 1.442695, %v1501_v37  ;;  %v1404_v9 = vpop.f32.mrf.mxu2 }
 0xd18   :  { %v1434_v10 = vadd.f32 %v2667_v27, %v1404_v9  ;;  %v1830_v27 = vld [vmem:[#allocation5 + $0x180] sm:$0xff] }
 0xd19   :  { %2274 = vpow2.f32 %v1504_v40 }
 0xd1f   :  { %v2275_v41 = vpop.eup %2274 }
 0xd20   :  { %v1509_v42 = vsel %vm180_vm2, %v2275_v41, 0.0 }
 0xd21   :  { %1510 = vadd.xlane.f32.xlu0 %v1509_v42 }
 0xd27   :  { %v1660_v44 = vpop.xlane.xlu1 %1659 }
 0xd28   :  { %v1664_v46 = vsub.f32 %v1656_v52, %v1660_v44 }
 0xd2a   :  { %v1666_v47 = vmul.f32 1.442695, %v1664_v46 }
 0xd2c   :  { %2276 = vpow2.f32 %v1666_v47 }
 0xd32   :  { %v2277_v48 = vpop.eup %2276 }
 0xd33   :  { %v1670_v50 = vsel %vm180_vm2, %v2277_v48, 0.0 }
 0xd34   :  { %1671 = vadd.xlane.f32.xlu2 %v1670_v50 }
 0xd3f   :  { %v1543_v51 = vpop.permute.xlu1 %1542 }
 0xd40   :  { %1563 = vmatpush.msrb.mxu1 %v1543_v51 }
 0xd4c   :  { %2188 = vrot.lane.b32.xlu2 %v2187_v49, %s2386_s27  ;;  %v2207_v49 = vld [vmem:[#allocation5 + $0x1d6] ss:$0 sm:$0xff] }
 0xd7d   :  { %v1663_v53 = vpop.xlane.xlu2 %1662 }
 0xd7e   :  { %v1665_v54 = vsub.f32 %v1657_v34, %v1663_v53  ;;  %v1828_v34 = vld [vmem:[#allocation5 + $0x170] sm:$0xff] }
 0xd80   :  { %v1668_v55 = vmul.f32 1.442695, %v1665_v54 }
 0xd82   :  { %2278 = vpow2.f32 %v1668_v55  ;;  %v1592_v11 = vpop.f32.mrf.mxu2  ;;  %v2208_v55 = vld [vmem:[#allocation5 + $0x1d7] ss:$0 sm:$0xff] }
 0xd83   :  { %v1598_v13 = vadd.f32 %v1592_v11, %v1431_v12 }
 0xd88   :  { %v2279_v56 = vpop.eup %2278 }
 0xd89   :  { %v1673_v20 = vsel %vm180_vm2, %v2279_v56, 0.0 }
 0xd8a   :  { %1674 = vadd.xlane.f32.xlu0 %v1673_v20 }
 0xd94   :  { %v1511_v57 = vpop.xlane.xlu0 %1510 }
 0xd95   :  { %2280 = vrcp.f32 %v1511_v57 }
 0xd9b   :  { %v2281_v58 = vpop.eup %2280 }
 0xd9c   :  { %v1515_v59 = vmul.f32 %v2281_v58, %v2275_v41 }
 0xd9e   :  { %2162 = vmatmul.msk.f32.vlgmr.msrb.gmra.mxu1 %vm180_vm2, %v1515_v59 }
 0xda7   :  { %v1672_v60 = vpop.xlane.xlu2 %1671 }
 0xda8   :  { %2282 = vrcp.f32 %v1672_v60 }
 0xdae   :  { %v2283_v61 = vpop.eup %2282 }
 0xdaf   :  { %v2189_v45 = vpop.permute.xlu2 %2188  ;;  %v1678_v63 = vmul.f32 %v2283_v61, %v2277_v48 }
 0xdb0   :  { %v2191_v38 = vunpack.i.h.bf16 %v2189_v45  ;;  %v2190_v62 = vunpack.i.l.bf16 %v2189_v45  ;;  %v1839_v45 = vld [vmem:[#allocation5 + $0x1c8] sm:$0xff] }
 0xdb1   :  { %1889 = vmatpush.msrb.mxu2 %v1839_v45  ;;  %v2211_v45 = vld [vmem:[#allocation5 + $0x1d8] ss:$0 sm:$0xff] }
 0xdb2   :  { %1701 = vmatpush.msra.mxu1 %v2190_v62  ;;  %1727 = vmatpush.msrb.mxu3 %v2191_v38  ;;  %v1838_v38 = vld [vmem:[#allocation5 + $0x1c0] sm:$0xff] }
 0xdb3   :  { %2169 = vmatmul.msk.f32.vlgmr.msra.gmra.mxu1 %vm180_vm2, %v1678_v63  ;;  %v1837_v63 = vld [vmem:[#allocation5 + $0x1b8] sm:$0xff]  ;;  %1890 = vmatpush.msrb.mxu2 %v1838_v38 }
 0xdb4   :  { %1860 = vmatpush.msrb.mxu1 %v1831_v32 }
 0xdb5   :  { %1891 = vmatpush.msrb.mxu2 %v1837_v63 }
 0xdb6   :  { %1861 = vmatpush.msrb.mxu1 %v1830_v27 }
 0xdb8   :  { %1862 = vmatpush.msrb.mxu1 %v1829_v23 }
 0xdba   :  { %1863 = vmatpush.msrb.mxu1 %v1828_v34 }
 0xdfd   :  { %v1675_v43 = vpop.xlane.xlu0 %1674 }
 0xdfe   :  { %2284 = vrcp.f32 %v1675_v43 }
 0xe04   :  { %v2285_v1 = vpop.eup %2284 }
 0xe05   :  { %v1679_v2 = vmul.f32 %v2285_v1, %v2279_v56  ;;  %v1836_v1 = vld [vmem:[#allocation5 + $0x1b0] sm:$0xff] }
 0xe06   :  { %1892 = vmatpush.msrb.mxu2 %v1836_v1 }
 0xe07   :  { %2170 = vmatmul.msk.f32.vlgmr.msrb.gmra.mxu3 %vm180_vm2, %v1679_v2 }
 0xe08   :  { %1893 = vmatpush.msrb.mxu2 %v1835_v3 }
 0xe1b   :  { %v1565_v4 = vpop.f32.mrf.mxu1 }
 0xe1c   :  { %2164 = vmatmul.msk.f32.gmra.mxu2 %vm180_vm2, %v1565_v4 }
 0xe30   :  { %v1703_v5 = vpop.f32.mrf.mxu1 }
 0xe31   :  { %2171 = vmatmul.msk.f32.vlgmr.msra.gmra.mxu0 %vm180_vm2, %v1703_v5 }
 0xe8a   :  { %v1729_v6 = vpop.f32.mrf.mxu3 }
 0xe8b   :  { %2172 = vmatmul.msk.f32.gmra.mxu0 %vm180_vm2, %v1729_v6 }
 0xe9f   :  { %v1595_v19 = vpop.f32.mrf.mxu2 }
 0xea0   :  { %v1599_v21 = vadd.f32 %v1595_v19, %v1434_v10 }
 0xeae   :  { %v1756_v39 = vpop.f32.mrf.mxu0 }
 0xeaf   :  { %v1762_v8 = vadd.f32 %v1756_v39, %v1598_v13 }
 0xeb1   :  { %v1766_v15 = vadd.f32 %v2206_v14, %v1762_v8 }
 0xeb3   :  { %v1768_v16 = vadd.f32 %v1766_v15, %v2561_v29  ;;  %v1834_v15 = vld [vmem:[#allocation5 + $0x1a0] sm:$0xff] }
 0xeb4   :  { %1894 = vmatpush.msrb.mxu2 %v1834_v15 }
 0xeb5   :  { %v1772_v17 = vsel %vm102_vm1, %v1768_v16, 0.0  ;;  %v1778_v18 = vmul.f32 %v1768_v16, %v1768_v16 }
 0xeb6   :  { %1773 = vadd.xlane.f32.xlu0 %v1772_v17  ;;  %v1832_v17 = vld [vmem:[#allocation5 + $0x190] sm:$0xff] }
 0xeb7   :  { %v1780_v31 = vsel %vm102_vm1, %v1778_v18, 0.0  ;;  %v2209_v18 = vld [vmem:[#allocation5 + $0x1d4] ss:$0 sm:$0xff] }
 0xebe   :  { %1781 = vadd.xlane.f32.xlu0 %v1780_v31 }
 0xf08   :  { %v1759_v22 = vpop.f32.mrf.mxu0 }
 0xf09   :  { %v1763_v24 = vadd.f32 %v1759_v22, %v1599_v21 }
 0xf0b   :  { %v1767_v25 = vadd.f32 %v2206_v14, %v1763_v24 }
 0xf0d   :  { %v2692_v26 = vadd.f32 %v1767_v25, %v2588_v0  ;;  %v2210_v25 = vld [vmem:[#allocation5 + $0x1d5] ss:$0 sm:$0xff] }
 0xf0f   :  { %v1775_v29 = vsel %vm102_vm1, %v2692_v26, 0.0  ;;  %v1779_v28 = vmul.f32 %v2692_v26, %v2692_v26 }
 0xf10   :  { %1776 = vadd.xlane.f32.xlu1 %v1775_v29 }
 0xf11   :  { %v1783_v52 = vsel %vm102_vm1, %v1779_v28, 0.0 }
 0xf12   :  { %1784 = vadd.xlane.f32.xlu0 %v1783_v52 }
 0xf29   :  { %v1774_v30 = vpop.xlane.xlu0 %1773 }
 0xf2a   :  { %v1786_v33 = vmul.f32 0.03125, %v1774_v30 }
 0xf2c   :  { %v1790_v35 = vmul.f32 %v1786_v33, %v1786_v33  ;;  %v1796_v51 = vsub.f32 %v1768_v16, %v1786_v33  ;;  %v1833_v16 = vld [vmem:[#allocation5 + $0x198] sm:$0xff] }
 0xf2d   :  { %1895 = vmatpush.msrb.mxu2 %v1833_v16 }
 0xf2f   :  { %1896 = vmatpush.msrb.mxu2 %v1832_v17 }
 0xf31   :  { %v1782_v0 = vpop.xlane.xlu0 %1781 }
 0xf32   :  { %v1788_v36 = vmul.f32 0.03125, %v1782_v0 }
 0xf34   :  { %v1792_v37 = vsub.f32 %v1788_v36, %v1790_v35 }
 0xf36   :  { %v1794_v40 = vmax.f32 %v1792_v37, 0.0 }
 0xf38   :  { %v1798_v41 = vadd.f32 1e-05, %v1794_v40 }
 0xf3a   :  { %2286 = vrsqrt.f32 %v1798_v41  ;;  %vm1806_vm2 = vweird.f32 %v1798_v41 }
 0xf40   :  { %v2287_v42 = vpop.eup %2286 }
 0xf41   :  { %v1801_v44 = vmul.f32 %v2287_v42, %v1798_v41  ;;  %vm1807_vm0 = vweird.f32 %v2287_v42 }
 0xf42   :  { %vm1808_vm3 = vmor %vm1806_vm2, %vm1807_vm0 }
 0xf43   :  { %v1802_v46 = vmul.f32 %v2287_v42, %v1801_v44 }
 0xf45   :  { %v1803_v47 = vmul.f32 0.5, %v1802_v46 }
 0xf47   :  { %v1804_v48 = vsub.f32 1.5, %v1803_v47 }
 0xf49   :  { %v1805_v50 = vmul.f32 %v2287_v42, %v1804_v48 }
 0xf4b   :  { %v1809_v53 = vsel %vm1808_vm3, %v2287_v42, %v1805_v50 }
 0xf4c   :  { %v1820_v54 = vmul.f32 %v1809_v53, %v1796_v51 }
 0xf4e   :  { %v1823_v56 = vmul.f32 %v2207_v49, %v1820_v54 }
 0xf50   :  { %v1826_v20 = vadd.f32 %v2208_v55, %v1823_v56 }
 0xf52   :  { %2173 = vmatmul.msk.f32.vlgmr.msrb.gmra.mxu1 %vm102_vm1, %v1826_v20 }
 0xf83   :  { %v1777_v57 = vpop.xlane.xlu1 %1776 }
 0xf84   :  { %v1787_v58 = vmul.f32 0.03125, %v1777_v57 }
 0xf85   :  { %v1785_v59 = vpop.xlane.xlu0 %1784 }
 0xf86   :  { %v1791_v60 = vmul.f32 %v1787_v58, %v1787_v58  ;;  %v1789_v61 = vmul.f32 0.03125, %v1785_v59  ;;  %v1797_v12 = vsub.f32 %v2692_v26, %v1787_v58 }
 0xf88   :  { %v1793_v62 = vsub.f32 %v1789_v61, %v1791_v60 }
 0xf8a   :  { %v1795_v43 = vmax.f32 %v1793_v62, 0.0 }
 0xf8c   :  { %v1799_v2 = vadd.f32 1e-05, %v1795_v43  ;;  %v2212_v43 = vld [vmem:[#allocation5 + $0x1d9] ss:$0 sm:$0xff] }
 0xf8e   :  { %2288 = vrsqrt.f32 %v1799_v2  ;;  %vm1816_vm5 = vweird.f32 %v1799_v2 }
 0xf94   :  { %v2289_v4 = vpop.eup %2288 }
 0xf95   :  { %v1811_v5 = vmul.f32 %v2289_v4, %v1799_v2  ;;  %vm1817_vm4 = vweird.f32 %v2289_v4 }
 0xf96   :  { %vm1818_vm7 = vmor %vm1816_vm5, %vm1817_vm4  ;;  %vm2047_vm4 = vcmask 1041408  }
 0xf97   :  { %v1812_v6 = vmul.f32 %v2289_v4, %v1811_v5  ;;  %v2387_v5 = vmov 8.0  }
 0xf99   :  { %v1813_v7 = vmul.f32 0.5, %v1812_v6 }
 0xf9b   :  { %v1814_v9 = vsub.f32 1.5, %v1813_v7 }
 0xf9d   :  { %v1815_v11 = vmul.f32 %v2289_v4, %v1814_v9 }
 0xf9f   :  { %v1819_v13 = vsel %vm1818_vm7, %v2289_v4, %v1815_v11 }
 0xfa0   :  { %v1821_v14 = vmul.f32 %v1819_v13, %v1797_v12 }
 0xfa2   :  { %v1824_v39 = vmul.f32 %v2207_v49, %v1821_v14 }
 0xfa4   :  { %v1827_v8 = vadd.f32 %v2208_v55, %v1824_v39 }
 0xfa6   :  { %2174 = vmatmul.msk.f32.gmra.mxu1 %vm102_vm1, %v1827_v8 }
 0xfcf   :  { %v1865_v31 = vpop.f32.mrf.mxu1 }
 0xfd0   :  { %v1866_v19 = vadd.f32 %v2209_v18, %v1865_v31 }
 0xfd2   :  { %v1871_v10 = vmax.f32 %v1866_v19, 0.0 }
 0xfd4   :  { %2175 = vmatmul.msk.f32.vlgmr.msrb.gmra.mxu2 %vm936_vm6, %v1871_v10 }
0x1023   :  { %v1868_v21 = vpop.f32.mrf.mxu1 }
0x1024   :  { %v1869_v22 = vadd.f32 %v2209_v18, %v1868_v21 }
0x1026   :  { %v1872_v24 = vmax.f32 %v1869_v22, 0.0 }
0x1028   :  { %2176 = vmatmul.msk.f32.gmra.mxu2 %vm936_vm6, %v1872_v24 }
0x1057   :  { %v1898_v26 = vpop.f32.mrf.mxu2 }
0x1058   :  { %v1899_v29 = vadd.f32 %v2210_v25, %v1898_v26 }
0x105a   :  { %v1904_v28 = vadd.f32 %v1899_v29, %v1826_v20 }
0x105c   :  { %v1908_v52 = vsel %vm102_vm1, %v1904_v28, 0.0  ;;  %v1914_v30 = vmul.f32 %v1904_v28, %v1904_v28 }
0x105d   :  { %1909 = vadd.xlane.f32.xlu2 %v1908_v52 }
0x105e   :  { %v1916_v32 = vsel %vm102_vm1, %v1914_v30, 0.0 }
0x105f   :  { %1917 = vadd.xlane.f32.xlu0 %v1916_v32 }
0x10ab   :  { %v1901_v27 = vpop.f32.mrf.mxu2 }
0x10ac   :  { %v1902_v23 = vadd.f32 %v2210_v25, %v1901_v27 }
0x10ae   :  { %v1905_v33 = vadd.f32 %v1902_v23, %v1827_v8 }
0x10b0   :  { %v1911_v34 = vsel %vm102_vm1, %v1905_v33, 0.0  ;;  %v1915_v0 = vmul.f32 %v1905_v33, %v1905_v33 }
0x10b1   :  { %1912 = vadd.xlane.f32.xlu0 %v1911_v34 }
0x10b2   :  { %v1919_v35 = vsel %vm102_vm1, %v1915_v0, 0.0 }
0x10b9   :  { %1920 = vadd.xlane.f32.xlu0 %v1919_v35 }
0x10d0   :  { %v1910_v36 = vpop.xlane.xlu2 %1909 }
0x10d1   :  { %v1922_v37 = vmul.f32 0.03125, %v1910_v36 }
0x10d2   :  { %v1918_v40 = vpop.xlane.xlu0 %1917 }
0x10d3   :  { %v1926_v41 = vmul.f32 %v1922_v37, %v1922_v37  ;;  %v1924_v42 = vmul.f32 0.03125, %v1918_v40  ;;  %v1932_v60 = vsub.f32 %v1904_v28, %v1922_v37 }
0x10d5   :  { %v1928_v44 = vsub.f32 %v1924_v42, %v1926_v41  ;;  %v2018_v41 = vld [vmem:[#allocation2 + $0x30] sm:$0xff]  ;;  %v2017_v42 = vld [vmem:[#allocation2 + $0x28] sm:$0xff] }
0x10d6   :  { %2039 = vmatpush.msra.mxu3 %v2018_v41 }
0x10d7   :  { %v1930_v46 = vmax.f32 %v1928_v44, 0.0  ;;  %v2016_v44 = vld [vmem:[#allocation2 + $0x20] sm:$0xff] }
0x10d8   :  { %2040 = vmatpush.msra.mxu3 %v2017_v42 }
0x10d9   :  { %v1934_v47 = vadd.f32 1e-05, %v1930_v46  ;;  %v2015_v46 = vld [vmem:[#allocation2 + $0x18] sm:$0xff] }
0x10da   :  { %2041 = vmatpush.msra.mxu3 %v2016_v44 }
0x10db   :  { %2290 = vrsqrt.f32 %v1934_v47  ;;  %vm1942_vm8 = vweird.f32 %v1934_v47 }
0x10dc   :  { %2042 = vmatpush.msra.mxu3 %v2015_v46 }
0x10e1   :  { %v2291_v48 = vpop.eup %2290 }
0x10e2   :  { %v1937_v50 = vmul.f32 %v2291_v48, %v1934_v47  ;;  %vm1943_vm6 = vweird.f32 %v2291_v48 }
0x10e3   :  { %vm1944_vm9 = vmor %vm1942_vm8, %vm1943_vm6 }
0x10e4   :  { %v1938_v51 = vmul.f32 %v2291_v48, %v1937_v50 }
0x10e6   :  { %v1939_v49 = vmul.f32 0.5, %v1938_v51 }
0x10e8   :  { %v1940_v54 = vsub.f32 1.5, %v1939_v49 }
0x10ea   :  { %v1941_v56 = vmul.f32 %v2291_v48, %v1940_v54 }
0x10ec   :  { %v1945_v59 = vsel %vm1944_vm9, %v2291_v48, %v1941_v56 }
0x10ed   :  { %v1956_v38 = vmul.f32 %v1945_v59, %v1932_v60 }
0x10ef   :  { %v1959_v1 = vmul.f32 %v2211_v45, %v1956_v38 }
0x10f1   :  { %v1962_v2 = vadd.f32 %v2212_v43, %v1959_v1 }
0x10f3   :  { %v1964_v6 = vsel %vm102_vm1, %v1962_v2, 0.0 }
0x10f4   :  { %v1965_v11 = vrot.slane %v1964_v6, 4 }
0x10f6   :  { %v1966_v39 = vadd.f32 %v1965_v11, %v1964_v6 }
0x10f8   :  { %v1967_v18 = vrot.slane %v1966_v39, 2 }
0x10fa   :  { %v1968_v21 = vadd.f32 %v1967_v18, %v1966_v39 }
0x10fc   :  { %v1969_v26 = vrot.slane %v1968_v21, 1 }
0x10fe   :  { %v1970_v30 = vadd.f32 %v1969_v26, %v1968_v21 }
0x1124   :  { %v1913_v53 = vpop.xlane.xlu0 %1912 }
0x1125   :  { %v1923_v55 = vmul.f32 0.03125, %v1913_v53 }
0x1127   :  { %v1927_v57 = vmul.f32 %v1923_v55, %v1923_v55  ;;  %v1933_v8 = vsub.f32 %v1905_v33, %v1923_v55 }
0x112c   :  { %v1921_v20 = vpop.xlane.xlu0 %1920 }
0x112d   :  { %v1925_v58 = vmul.f32 0.03125, %v1921_v20 }
0x112f   :  { %v1929_v61 = vsub.f32 %v1925_v58, %v1927_v57 }
0x1131   :  { %v1931_v62 = vmax.f32 %v1929_v61, 0.0  ;;  %v2213_v61 = vld [vmem:[#allocation2 + $0x39] ss:$0 sm:$0xff] }
0x1133   :  { %v1935_v63 = vadd.f32 1e-05, %v1931_v62 }
0x1135   :  { %2292 = vrsqrt.f32 %v1935_v63  ;;  %vm1952_vm11 = vweird.f32 %v1935_v63 }
0x1136   :  { %2294 = vrcp.f32 %v2387_v5 }
0x113b   :  { %v2293_v3 = vpop.eup %2292 }
0x113c   :  { %v1947_v4 = vmul.f32 %v2293_v3, %v1935_v63  ;;  %v2295_v12 = vpop.eup %2294  ;;  %vm1953_vm10 = vweird.f32 %v2293_v3 }
0x113d   :  { %vm1954_vm12 = vmor %vm1952_vm11, %vm1953_vm10  ;;  %v1979_v15 = vmul.f32 8.0, %v2295_v12  ;;  %vm1983_vm13 = vweird.f32 %v2295_v12 }
0x113e   :  { %v1948_v7 = vmul.f32 %v2293_v3, %v1947_v4 }
0x113f   :  { %v1980_v19 = vsub.f32 1.0, %v1979_v15 }
0x1140   :  { %v1949_v9 = vmul.f32 0.5, %v1948_v7 }
0x1141   :  { %v1981_v24 = vmul.f32 %v2295_v12, %v1980_v19 }
0x1142   :  { %v1950_v13 = vsub.f32 1.5, %v1949_v9 }
0x1143   :  { %v1982_v28 = vadd.f32 %v2295_v12, %v1981_v24 }
0x1144   :  { %v1951_v14 = vmul.f32 %v2293_v3, %v1950_v13 }
0x1145   :  { %v1984_v27 = vsel %vm1983_vm13, %v2295_v12, %v1982_v28 }
0x1146   :  { %v1955_v16 = vsel %vm1954_vm12, %v2293_v3, %v1951_v14  ;;  %v1985_v34 = vmul.f32 %v1984_v27, %v1970_v30 }
0x1147   :  { %v1957_v17 = vmul.f32 %v1955_v16, %v1933_v8 }
0x1148   :  { %v1987_v35 = vmul.f32 %v1985_v34, %v1985_v34 }
0x1149   :  { %v1960_v31 = vmul.f32 %v2211_v45, %v1957_v17 }
0x114b   :  { %v1963_v10 = vadd.f32 %v2212_v43, %v1960_v31 }
0x114d   :  { %v1971_v22 = vsel %vm102_vm1, %v1963_v10, 0.0 }
0x114e   :  { %v1972_v25 = vrot.slane %v1971_v22, 4 }
0x1150   :  { %v1973_v29 = vadd.f32 %v1972_v25, %v1971_v22 }
0x1152   :  { %v1974_v52 = vrot.slane %v1973_v29, 2 }
0x1154   :  { %v1975_v32 = vadd.f32 %v1974_v52, %v1973_v29 }
0x1156   :  { %v1976_v23 = vrot.slane %v1975_v32, 1 }
0x1158   :  { %v1977_v33 = vadd.f32 %v1976_v23, %v1975_v32 }
0x115a   :  { %v1986_v0 = vmul.f32 %v1984_v27, %v1977_v33 }
0x115c   :  { %v1988_v36 = vmul.f32 %v1986_v0, %v1986_v0 }
0x115e   :  { %v1992_v37 = vsel %vm1991_vm14, %v1988_v36, %v1987_v35 }
0x115f   :  { %v1995_v40 = vsel %vm1994_vm15, %v1992_v37, 0.0 }
0x1160   :  { %1996 = vadd.xlane.f32.xlu0 %v1995_v40 }
0x11d3   :  { %v1997_v47 = vpop.xlane.xlu0 %1996 }
0x11d4   :  { %v1998_v48 = vmax.f32 %v1997_v47, 1e-24 }
0x11d6   :  { %2296 = vrsqrt.f32 %v1998_v48  ;;  %vm2005_vm2 = vweird.f32 %v1998_v48 }
0x11dc   :  { %v2297_v50 = vpop.eup %2296 }
0x11dd   :  { %v2000_v51 = vmul.f32 %v2297_v50, %v1998_v48  ;;  %vm2006_vm0 = vweird.f32 %v2297_v50 }
0x11de   :  { %vm2007_vm3 = vmor %vm2005_vm2, %vm2006_vm0 }
0x11df   :  { %v2001_v49 = vmul.f32 %v2297_v50, %v2000_v51 }
0x11e1   :  { %v2002_v53 = vmul.f32 0.5, %v2001_v49 }
0x11e3   :  { %v2003_v54 = vsub.f32 1.5, %v2002_v53 }
0x11e5   :  { %v2004_v55 = vmul.f32 %v2297_v50, %v2003_v54 }
0x11e7   :  { %v2008_v56 = vsel %vm2007_vm3, %v2297_v50, %v2004_v55 }
0x11e8   :  { %v2010_v20 = vrot.slane %v2008_v56, 1  ;;  %v2013_v58 = vmul.f32 %v2008_v56, %v1985_v34 }
0x11ea   :  { %v2014_v57 = vmul.f32 %v2010_v20, %v1986_v0 }
0x11ec   :  { %v2023_v59 = vrot.slane %v2014_v57, 7 }
0x11ee   :  { %v2024_v60 = vsel %vm1991_vm14, %v2023_v59, %v2013_v58 }
0x11ef   :  { %2177 = vmatmul.msk.f32.vlgmr.msra.gmra.mxu3 %vm102_vm1, %v2024_v60 }
0x1272   :  { %v2044_v45 = vpop.f32.mrf.mxu3 }
0x1273   :  { %v2045_v38 = vadd.f32 %v2213_v61, %v2044_v45 }
0x1275   :  { %v2048_v62 = vsel %vm2047_vm4, %v2045_v38, -inf }
0x1276   :  { %2049 = vmax.xlane.f32.xlu0 %v2048_v62 }
0x12e9   :  { %v2050_v63 = vpop.xlane.xlu0 %2049 }
0x12ea   :  { %v2051_v43 = vsub.f32 %v2045_v38, %v2050_v63 }
0x12ec   :  { %v2052_v1 = vmul.f32 1.442695, %v2051_v43 }
0x12ee   :  { %2298 = vpow2.f32 %v2052_v1 }
0x12f4   :  { %v2299_v2 = vpop.eup %2298 }
0x12f5   :  { %v2054_v3 = vsel %vm2047_vm4, %v2299_v2, 0.0 }
0x12f6   :  { %2055 = vadd.xlane.f32.xlu1 %v2054_v3 }
0x1369   :  { %v2056_v4 = vpop.xlane.xlu1 %2055 }
0x136a   :  { %2300 = vrcp.f32 %v2056_v4  ;;  %v2068_v9 = vand.u32 2147483648, %v2056_v4  ;;  %v2066_v12 = vand.u32 2147483647, %v2056_v4  ;;  %vm2062_vm5 = vweird.f32 %v2056_v4 }
0x136c   :  { %v2069_v14 = vor.u32 1.1754944e-38, %v2068_v9  ;;  %vm2067_vm6 = vcmp.eq.f32.partialorder %v2066_v12, 8.507059e+37 }
0x1370   :  { %v2301_v5 = vpop.eup %2300 }
0x1371   :  { %v2058_v6 = vmul.f32 %v2301_v5, %v2056_v4  ;;  %vm2063_vm1 = vweird.f32 %v2301_v5 }
0x1372   :  { %vm2064_vm7 = vmor %vm2062_vm5, %vm2063_vm1 }
0x1373   :  { %v2059_v7 = vsub.f32 1.0, %v2058_v6 }
0x1375   :  { %v2060_v11 = vmul.f32 %v2301_v5, %v2059_v7 }
0x1377   :  { %v2061_v13 = vadd.f32 %v2301_v5, %v2060_v11 }
0x1379   :  { %v2065_v39 = vsel %vm2064_vm7, %v2301_v5, %v2061_v13 }
0x137a   :  { %v2070_v8 = vsel %vm2067_vm6, %v2069_v14, %v2065_v39 }
0x137b   :  { %v2071_v15 = vmul.f32 %v2299_v2, %v2070_v8 }
0x137d   :  { %2072 = vst [vmem:[#allocation7] sm:$0x3] %v2071_v15 }
0x137e   :  { %2083 = dma.vmem_to_hbm [thread:$0]  %s2079_s29, 32, %s2081_s5, [#allocation4]  }
0x137f   :  { %2378 = dma.done.wait [#allocation4], 32  }
0x1380   :  { %2379 = vsyncadd [#allocation4], 4294967264 }
0x1381   :  { %2088 = vsyncpa [#allocation3], 1 }
0x1382   :  { %2089 = vsyncpa [#allocation6], 1 }
0x1383   :  { %2090 = vsyncpa [#allocation4], 1 }

</bundles_post_ra>
